<compile_context>
chip_gen: v7x
topology: tpu7x:2x2x1
jax: 0.10.0
libtpu: 0.0.40
codegen_flags: <defaults>
</compile_context>

<pallas_src>
import jax
import jax.numpy as jnp
from jax.experimental import pallas as pl
from jax.experimental.pallas import tpu as pltpu


VMEM_LIMIT_BYTES = 48 << 20   # > scoped defaults (16/32 MiB), < v7x 64 MiB physical


def _round_up(v, m):
    return ((v + m - 1) // m) * m


def _pick_tile_n(n, f, l, itemsize, *, vmem_stream_budget=12 << 20, max_tile=1024):
    """Rows per grid step.

    As large as the streaming VMEM budget allows (double-buffered x tile in,
    feat/attn tiles out), a multiple of 128 (lane / MXU friendly), never larger
    than the row-padded problem, and capped so the grid keeps >= 2 steps when
    possible (so v7x megacore can shard the parallel grid axis).
    """
    bytes_per_row = 2 * (f + l + 8) * itemsize
    t = (vmem_stream_budget // max(bytes_per_row, 1)) // 128 * 128
    t = int(max(128, min(t, max_tile)))
    t = min(t, _round_up(n, 128))
    if n > 128:
        t = min(t, _round_up(-(-n // 2), 128))
    return max(t, 128)


def enc_attn_kernel(x_ref, w1_ref, b1_ref, wa1_ref, ba1_ref, wa2_ref, ba2_ref,
                    attn_ref, feat_ref):
    x = x_ref[...]

    # tail: Linear(F, L) + ReLU  -- MXU matmul with f32 accumulation.
    h = jnp.dot(x, w1_ref[...], preferred_element_type=jnp.float32)
    h = jnp.maximum(h + b1_ref[...].astype(jnp.float32), 0.0)

    # attention fc1: Linear(L, D) + Tanh  -- MXU matmul + EUP tanh.
    a = jnp.dot(h.astype(wa1_ref.dtype), wa1_ref[...],
                preferred_element_type=jnp.float32)
    a = jnp.tanh(a + ba1_ref[...].astype(jnp.float32))

    # attention fc2: Linear(D, 1). A 1-column MXU matmul wastes >99% of the
    # systolic array's output lanes, so do it as a VPU multiply + lane (XLU)
    # reduction instead; ba2 is an SMEM scalar.
    w2 = wa2_ref[...].astype(jnp.float32)               # (1, D)
    score = jnp.sum(a * w2, axis=-1) + ba2_ref[0]       # (tile_n,)

    # Lane-dense store of the scores (avoids masked vst on a (T, 1) column).
    attn_ref[0, 0, :] = score.astype(attn_ref.dtype)
    feat_ref[...] = h.astype(feat_ref.dtype)


def enc_attn(x, w1, b1, wa1, ba1, wa2, ba2, *, tile_n=None):
    """Returns (attn, feat) just like EncAttn.forward (head=False).

    Shapes: x (N,F), w1 (F,L), b1 (1,L), wa1 (L,D), ba1 (1,D), wa2 (D,1),
    ba2 (1,1). attn is (N,1), feat is (N,L). Works with f32 or bf16 inputs
    (matmuls always accumulate in f32).
    """
    N, F = x.shape
    L = w1.shape[1]
    D = wa1.shape[1]
    itemsize = jnp.dtype(x.dtype).itemsize

    b1 = b1.reshape(1, L)
    ba1 = ba1.reshape(1, D)
    wa2_row = wa2.reshape(1, D)                       # (D,1) -> (1,D) row for VPU
    ba2_s = ba2.reshape(-1)[:1].astype(jnp.float32)   # SMEM scalar (always 32-bit)

    if tile_n is None:
        tile_n = _pick_tile_n(N, F, L, itemsize)
    tile_n = int(tile_n)

    grid = pl.cdiv(N, tile_n)
    n_pad = grid * tile_n
    x_in = jnp.pad(x, ((0, n_pad - N), (0, 0))) if n_pad != N else x

    cost = pl.CostEstimate(
        flops=2 * N * (F * L + L * D + D),
        transcendentals=N * D,
        bytes_accessed=itemsize * (N * F + F * L + L + L * D + D + D + N * L + N) + 4,
    )

    attn3d, feat = pl.pallas_call(
        enc_attn_kernel,
        out_shape=(jax.ShapeDtypeStruct((grid, 1, tile_n), x.dtype),
                   jax.ShapeDtypeStruct((n_pad, L), x.dtype)),
        grid_spec=pltpu.PrefetchScalarGridSpec(
            num_scalar_prefetch=0,
            grid=(grid,),
            in_specs=[
                pl.BlockSpec((tile_n, F), lambda i: (i, 0)),   # x tile (streamed)
                pl.BlockSpec((F, L), lambda i: (0, 0)),        # tail weight (resident)
                pl.BlockSpec((1, L), lambda i: (0, 0)),        # tail bias
                pl.BlockSpec((L, D), lambda i: (0, 0)),        # attn fc1 weight
                pl.BlockSpec((1, D), lambda i: (0, 0)),        # attn fc1 bias
                pl.BlockSpec((1, D), lambda i: (0, 0)),        # attn fc2 weight (row)
                pl.BlockSpec(memory_space=pltpu.MemorySpace.SMEM),  # attn fc2 bias scalar
            ],
            out_specs=[
                pl.BlockSpec((1, 1, tile_n), lambda i: (i, 0, 0)),  # scores, lane-dense
                pl.BlockSpec((tile_n, L), lambda i: (i, 0)),        # features (tail out)
            ],
        ),
        compiler_params=pltpu.CompilerParams(
            dimension_semantics=("parallel",),
            vmem_limit_bytes=VMEM_LIMIT_BYTES),
        cost_estimate=cost,
    )(x_in, w1, b1, wa1, ba1, wa2_row, ba2_s)

    attn = attn3d.reshape(n_pad, 1)[:N]
    feat = feat[:N]
    return attn, feat


def reference(x, w1, b1, wa1, ba1, wa2, ba2):
    h = jnp.maximum(x @ w1 + b1, 0.0)
    a = jnp.tanh(h @ wa1 + ba1)
    attn = a @ wa2 + ba2
    return attn, h


if __name__ == "__main__":
    # Small shapes: bag of N=300 patch feature vectors of dim F=64,
    # tail hidden L=64, attention hidden D=32. N is deliberately not a
    # multiple of the tile size to exercise the padding path (grid = 2).
    N, F, L, D = 300, 64, 64, 32

    key = jax.random.PRNGKey(0)
    kx, k1, k2, k3, k4, k5, k6 = jax.random.split(key, 7)

    x   = jax.random.normal(kx, (N, F), dtype=jnp.float32)
    w1  = jax.random.normal(k1, (F, L), dtype=jnp.float32) * 0.05
    b1  = jax.random.normal(k2, (1, L), dtype=jnp.float32) * 0.05
    wa1 = jax.random.normal(k3, (L, D), dtype=jnp.float32) * 0.05
    ba1 = jax.random.normal(k4, (1, D), dtype=jnp.float32) * 0.05
    wa2 = jax.random.normal(k5, (D, 1), dtype=jnp.float32) * 0.05
    ba2 = jax.random.normal(k6, (1, 1), dtype=jnp.float32) * 0.05

    # f32 run + correctness check.
    attn, feat = enc_attn(x, w1, b1, wa1, ba1, wa2, ba2)
    attn = jax.block_until_ready(attn)
    feat = jax.block_until_ready(feat)

    attn_ref, feat_ref = reference(x, w1, b1, wa1, ba1, wa2, ba2)
    assert attn.shape == (N, 1) and feat.shape == (N, L)
    assert jnp.allclose(attn, attn_ref, atol=1e-4, rtol=1e-4)
    assert jnp.allclose(feat, feat_ref, atol=1e-4, rtol=1e-4)

    # bf16 I/O run (halves HBM traffic on this bandwidth-bound op; matmuls
    # still accumulate in f32 inside the kernel).
    bf = lambda t: t.astype(jnp.bfloat16)
    attn_bf, feat_bf = enc_attn(bf(x), bf(w1), bf(b1), bf(wa1), bf(ba1),
                                bf(wa2), bf(ba2))
    attn_bf = jax.block_until_ready(attn_bf)
    feat_bf = jax.block_until_ready(feat_bf)
    assert attn_bf.dtype == jnp.bfloat16 and feat_bf.dtype == jnp.bfloat16
    assert jnp.allclose(attn_bf.astype(jnp.float32), attn_ref, atol=1e-1, rtol=1e-1)
    assert jnp.allclose(feat_bf.astype(jnp.float32), feat_ref, atol=1e-1, rtol=1e-1)

    # Small grid=1 case still works (N=16 -> padded to one 128-row tile).
    attn_s, feat_s = enc_attn(x[:16], w1, b1, wa1, ba1, wa2, ba2)
    jax.block_until_ready(attn_s)
    assert attn_s.shape == (16, 1) and feat_s.shape == (16, L)
    assert jnp.allclose(attn_s, attn_ref[:16], atol=1e-4, rtol=1e-4)

    print("KERNEL_OK")
</pallas_src>

<mosaic_0001>
module attributes {stable_mosaic.version = 11 : i64} {
  func.func @enc_attn_kernel(%arg0: i32, %arg1: memref<256x64xf32, #tpu.memory_space<vmem>>, %arg2: memref<64x64xf32, #tpu.memory_space<vmem>>, %arg3: memref<1x64xf32, #tpu.memory_space<vmem>>, %arg4: memref<64x32xf32, #tpu.memory_space<vmem>>, %arg5: memref<1x32xf32, #tpu.memory_space<vmem>>, %arg6: memref<1x32xf32, #tpu.memory_space<vmem>>, %arg7: memref<1xf32, #tpu.memory_space<smem>>, %arg8: memref<1x1x256xf32, #tpu.memory_space<vmem>>, %arg9: memref<256x64xf32, #tpu.memory_space<vmem>>) attributes {dimension_semantics = [#tpu.dimension_semantics<parallel>], iteration_bounds = array<i64: 2>, scalar_prefetch = 0 : i64, scratch_operands = 0 : i64, tpu.core_type = #tpu.core_type<tc>, window_params = [{transform_indices = @transform_0, window_bounds = array<i64: 256, 64>}, {pipeline_mode = #tpu.pipeline_mode<synchronous>, transform_indices = @transform_1, window_bounds = array<i64: 64, 64>}, {pipeline_mode = #tpu.pipeline_mode<synchronous>, transform_indices = @transform_2, window_bounds = array<i64: 1, 64>}, {pipeline_mode = #tpu.pipeline_mode<synchronous>, transform_indices = @transform_3, window_bounds = array<i64: 64, 32>}, {pipeline_mode = #tpu.pipeline_mode<synchronous>, transform_indices = @transform_4, window_bounds = array<i64: 1, 32>}, {pipeline_mode = #tpu.pipeline_mode<synchronous>, transform_indices = @transform_5, window_bounds = array<i64: 1, 32>}, {transform_indices = @transform_6, window_bounds = array<i64: 1>}, {transform_indices = @transform_7, window_bounds = array<i64: 1, 1, 256>}, {transform_indices = @transform_8, window_bounds = array<i64: 256, 64>}]} {
    %c0 = arith.constant 0 : index
    %c0_0 = arith.constant 0 : index
    %0 = vector.load %arg1[%c0, %c0_0] : memref<256x64xf32, #tpu.memory_space<vmem>>, vector<256x64xf32>
    %c0_1 = arith.constant 0 : index
    %c0_2 = arith.constant 0 : index
    %1 = vector.load %arg2[%c0_1, %c0_2] : memref<64x64xf32, #tpu.memory_space<vmem>>, vector<64x64xf32>
    %cst = arith.constant dense<0.000000e+00> : vector<256x64xf32>
    %2 = tpu.matmul %0, %1, %cst {dimension_numbers = #tpu.dot_dimension_numbers<[1], [0], [0], [1], [0, 0, 1, 1], [], []>} : vector<256x64xf32>, vector<64x64xf32>, vector<256x64xf32> -> vector<256x64xf32>
    %c0_3 = arith.constant 0 : index
    %c0_4 = arith.constant 0 : index
    %3 = vector.load %arg3[%c0_3, %c0_4] : memref<1x64xf32, #tpu.memory_space<vmem>>, vector<1x64xf32>
    %4 = vector.broadcast %3 : vector<1x64xf32> to vector<256x64xf32>
    %5 = arith.addf %2, %4 : vector<256x64xf32>
    %cst_5 = arith.constant 0.000000e+00 : f32
    %6 = vector.broadcast %cst_5 : f32 to vector<256x64xf32>
    %7 = arith.maximumf %5, %6 : vector<256x64xf32>
    %c0_6 = arith.constant 0 : index
    %c0_7 = arith.constant 0 : index
    %8 = vector.load %arg4[%c0_6, %c0_7] : memref<64x32xf32, #tpu.memory_space<vmem>>, vector<64x32xf32>
    %cst_8 = arith.constant dense<0.000000e+00> : vector<256x32xf32>
    %9 = tpu.matmul %7, %8, %cst_8 {dimension_numbers = #tpu.dot_dimension_numbers<[1], [0], [0], [1], [0, 0, 1, 1], [], []>} : vector<256x64xf32>, vector<64x32xf32>, vector<256x32xf32> -> vector<256x32xf32>
    %c0_9 = arith.constant 0 : index
    %c0_10 = arith.constant 0 : index
    %10 = vector.load %arg5[%c0_9, %c0_10] : memref<1x32xf32, #tpu.memory_space<vmem>>, vector<1x32xf32>
    %11 = vector.broadcast %10 : vector<1x32xf32> to vector<256x32xf32>
    %12 = arith.addf %9, %11 : vector<256x32xf32>
    %13 = math.tanh %12 : vector<256x32xf32>
    %c0_11 = arith.constant 0 : index
    %c0_12 = arith.constant 0 : index
    %14 = vector.load %arg6[%c0_11, %c0_12] : memref<1x32xf32, #tpu.memory_space<vmem>>, vector<1x32xf32>
    %15 = vector.broadcast %14 : vector<1x32xf32> to vector<256x32xf32>
    %16 = arith.mulf %13, %15 : vector<256x32xf32>
    %cst_13 = arith.constant dense<0.000000e+00> : vector<256xf32>
    %17 = vector.multi_reduction <add>, %16, %cst_13 [1] : vector<256x32xf32> to vector<256xf32>
    %c0_14 = arith.constant 0 : index
    %18 = memref.load %arg7[%c0_14] : memref<1xf32, #tpu.memory_space<smem>>
    %19 = vector.broadcast %18 : f32 to vector<256xf32>
    %20 = arith.addf %17, %19 : vector<256xf32>
    %c0_15 = arith.constant 0 : index
    %c0_16 = arith.constant 0 : index
    %c0_17 = arith.constant 0 : index
    %21 = vector.load %arg8[%c0_15, %c0_16, %c0_17] : memref<1x1x256xf32, #tpu.memory_space<vmem>>, vector<1x1x256xf32>
    %22 = vector.shape_cast %21 : vector<1x1x256xf32> to vector<256xf32>
    %23 = vector.shape_cast %20 : vector<256xf32> to vector<1x1x256xf32>
    tpu.vector_store %arg8[%c0_15, %c0_16, %c0_17], %23 {strides = array<i32>} : memref<1x1x256xf32, #tpu.memory_space<vmem>>, vector<1x1x256xf32>,
    %c0_18 = arith.constant 0 : index
    %c0_19 = arith.constant 0 : index
    %24 = vector.load %arg9[%c0_18, %c0_19] : memref<256x64xf32, #tpu.memory_space<vmem>>, vector<256x64xf32>
    tpu.vector_store %arg9[%c0_18, %c0_19], %7 {strides = array<i32>} : memref<256x64xf32, #tpu.memory_space<vmem>>, vector<256x64xf32>,
    return
  }
  func.func @transform_0(%arg0: i32) -> (i32, i32) {
    %c0_i32 = arith.constant 0 : i32
    %c0_i32_0 = arith.constant 0 : i32
    return %arg0, %c0_i32 : i32, i32
  }
  func.func @transform_1(%arg0: i32) -> (i32, i32) {
    %c0_i32 = arith.constant 0 : i32
    %c0_i32_0 = arith.constant 0 : i32
    %c0_i32_1 = arith.constant 0 : i32
    return %c0_i32, %c0_i32_0 : i32, i32
  }
  func.func @transform_2(%arg0: i32) -> (i32, i32) {
    %c0_i32 = arith.constant 0 : i32
    %c0_i32_0 = arith.constant 0 : i32
    %c0_i32_1 = arith.constant 0 : i32
    return %c0_i32, %c0_i32_0 : i32, i32
  }
  func.func @transform_3(%arg0: i32) -> (i32, i32) {
    %c0_i32 = arith.constant 0 : i32
    %c0_i32_0 = arith.constant 0 : i32
    %c0_i32_1 = arith.constant 0 : i32
    return %c0_i32, %c0_i32_0 : i32, i32
  }
  func.func @transform_4(%arg0: i32) -> (i32, i32) {
    %c0_i32 = arith.constant 0 : i32
    %c0_i32_0 = arith.constant 0 : i32
    %c0_i32_1 = arith.constant 0 : i32
    return %c0_i32, %c0_i32_0 : i32, i32
  }
  func.func @transform_5(%arg0: i32) -> (i32, i32) {
    %c0_i32 = arith.constant 0 : i32
    %c0_i32_0 = arith.constant 0 : i32
    %c0_i32_1 = arith.constant 0 : i32
    return %c0_i32, %c0_i32_0 : i32, i32
  }
  func.func @transform_6(%arg0: i32) -> i32 {
    %c0_i32 = arith.constant 0 : i32
    %c0_i32_0 = arith.constant 0 : i32
    return %c0_i32 : i32
  }
  func.func @transform_7(%arg0: i32) -> (i32, i32, i32) {
    %c0_i32 = arith.constant 0 : i32
    %c0_i32_0 = arith.constant 0 : i32
    %c0_i32_1 = arith.constant 0 : i32
    return %arg0, %c0_i32, %c0_i32_0 : i32, i32, i32
  }
  func.func @transform_8(%arg0: i32) -> (i32, i32) {
    %c0_i32 = arith.constant 0 : i32
    %c0_i32_0 = arith.constant 0 : i32
    return %arg0, %c0_i32 : i32, i32
  }
}

</mosaic_0001>

<bundles_post_ra>
// kernel: tpu_custom_call.1
= control target key start
LH: loop header
LB: loop body
LE: loop exit
PB: predicated region body
PF: predicated region fallthrough
CT: control target
= control target key end

     0   :  { %s6235_s0 = inlined_call_operand.vmem [shape: f32[512,64], index: 0, kind: input, shape index: {}]   ;;  %s6236_s1 = inlined_call_operand.vmem [shape: f32[64,64], index: 1, kind: input, shape index: {}]   ;;  %s6237_s2 = inlined_call_operand.vmem [shape: f32[1,64], index: 2, kind: input, shape index: {}]   ;;  %s6238_s3 = inlined_call_operand.vmem [shape: f32[64,32], index: 3, kind: input, shape index: {}]   ;;  %s6239_s4 = inlined_call_operand.vmem [shape: f32[1,32], index: 4, kind: input, shape index: {}]   ;;  %s6240_s5 = inlined_call_operand.vmem [shape: f32[1,32], index: 5, kind: input, shape index: {}]   ;;  %s6241_s6 = inlined_call_operand.<no memory space> [shape: f32[1], index: 6, kind: input, shape index: {}]   ;;  %s6242_s7 = inlined_call_operand.hbm [shape: f32[2,1,256], index: 7, kind: output, shape index: {0}]   ;;  %s6243_s8 = inlined_call_operand.vmem [shape: f32[512,64], index: 8, kind: output, shape index: {1}]  }
   0x1   :  { %14 = sst [smem:[#allocation2]] %s6241_s6 }
   0x2   :  { %15 = vsyncpa [#allocation4], 0 }
   0x3   :  { %17 = vsyncpa [#allocation4 + $0x1], 0  ;;  %s4875_s29 = smov 0   ;;  %s4877_s30 = smov 0  }
   0x4   :  { %s4879_s9 = smov 0   ;;  %s4881_s10 = smov 0  }
   0x5 LB: > { %s4330_s6 = sadd.s32 4294967295, %s4822_s10   ;;  %s4331_s11 = sadd.s32 4294967294, %s4822_s10   ;;  %s4822_s10 = sphi %s4881_s10, %s6249_s10   ;;  %s4818_s9 = sphi %s4879_s9, %s6248_s9   ;;  %s4814_s30 = sphi %s4877_s30, %s6247_s30   ;;  %s4810_s29 = sphi %s4875_s29, %s6246_s29  }
   0x6   : > { %s4898_s12 = sadd.s32 1, %s4822_s10   ;;  %s182_s13 = sadd.s32 1, %s4818_s9 }
   0x7   : > { %s179_s14 = ssub.s32 %s4822_s10, %s4898_s12  ;;  %p192_p0 = scmp.ne.s32.totalorder %s4818_s9, %s4814_s30 }
   0x8   : > { %p180_p1 = scmp.eq.s32.totalorder %s179_s14, 0  ;;  %p193_p2 = scmp.eq.s32.totalorder %s4330_s6, 1 }
   0x9   : > { %p198_p3 = scmp.ne.s32.totalorder %s4814_s30, %s4810_s29  ;;  %p199_p4 = scmp.eq.s32.totalorder %s4331_s11, 1 }
   0xa   : > { %s4908_s15 = scalar_select %p180_p1, %s4818_s9, %s182_s13  }
   0xb   : > { %p4910_p5 = por %p193_p2, %p192_p0  ;;  %p4914_p6 = por %p199_p4, %p198_p3 }
   0xc   : > { %p4334_p7 = scmp.ge.s32.totalorder %s4822_s10, 1  ;;  %p270_p8 = scmp.lt.s32.totalorder %s4822_s10, 3 }
   0xe   : > { %p271_p9 = pnand %p4334_p7, %p270_p8 }
   0xf   : > { %v353_v0 = vld [vmem:[%s6236_s1] sm:$0xff] (!%p271_p9)  ;;  %v354_v1 = vld [vmem:[%s6236_s1 + $0x8] sm:$0xff] (!%p271_p9)  ;;  %v355_v2 = vld [vmem:[%s6236_s1 + $0x10] sm:$0xff] (!%p271_p9)  ;;  %s4929_s24 = sshll.u32 (!%p271_p9), %s4330_s6, 5  ;;  %vm368_vm0 = vcmask (!%p271_p9), 523264   ;;  %vm1129_vm1 = vcmask (!%p271_p9), 261120  }
  0x10   : > { %274 = sbr.rel (%p271_p9) target bundleno = 958 (0x3be), region = 48  ;;  %v4621_v3 = vpack.c.bf16 (!%p271_p9), %v354_v1, %v353_v0  ;;  %v356_v4 = vld [vmem:[%s6236_s1 + $0x18] sm:$0xff] (!%p271_p9)  ;;  %p310_p10 = scmp.lt.s32.totalorder (!%p271_p9), %s4929_s24, 63  ;;  %v357_v6 = vld [vmem:[%s6236_s1 + $0x20] sm:$0xff] (!%p271_p9)  ;;  %v358_v7 = vld [vmem:[%s6236_s1 + $0x28] sm:$0xff] (!%p271_p9)  ;;  %vm3991_vm2 = vcmask (!%p271_p9), 130112  }
  0x11   : > { %v4625_v5 = vpack.c.bf16 (!%p271_p9), %v356_v4, %v355_v2  ;;  %v722_v8 = vld [vmem:[%s6238_s3] sm:$0xff] (!%p271_p9)  ;;  %v723_v9 = vld [vmem:[%s6238_s3 + $0x8] sm:$0xff] (!%p271_p9)  ;;  %v724_v10 = vld [vmem:[%s6238_s3 + $0x10] sm:$0xff] (!%p271_p9)  ;;  %v4629_v13 = vpack.c.bf16 (!%p271_p9), %v358_v7, %v357_v6  ;;  %vm3998_vm3 = vcmask (!%p271_p9), 195712   ;;  %vm4005_vm4 = vcmask (!%p271_p9), 261312   ;;  %s299_s25 = sand.u32 (!%p271_p9), 1, %s4814_s30   ;;  %s6191_s6 = scalar_lea.hbm (!%p271_p9), %s6242_s7, %s4929_s24 }
  0x12   : > { %4622 = vmatprep.subr.bf16.mxu0 (!%p271_p9), %v4621_v3  ;;  %v725_v11 = vld [vmem:[%s6238_s3 + $0x18] sm:$0xff] (!%p271_p9)  ;;  %v4637_v12 = vpack.c.bf16 (!%p271_p9), %v723_v9, %v722_v8  ;;  %v726_v15 = vld [vmem:[%s6238_s3 + $0x20] sm:$0xff] (!%p271_p9)  ;;  %v727_v16 = vld [vmem:[%s6238_s3 + $0x28] sm:$0xff] (!%p271_p9)  ;;  %vm4012_vm5 = vcmask (!%p271_p9), 326912   ;;  %vm4019_vm6 = vcmask (!%p271_p9), 392512   ;;  %vm4026_vm7 = vcmask (!%p271_p9), 458112  }
  0x13   : > { %4624 = vmatpush3.bf16.msra.mxu0 (!%p271_p9), %v4621_v3  ;;  %v4641_v14 = vpack.c.bf16 (!%p271_p9), %v725_v11, %v724_v10  ;;  %v359_v17 = vld [vmem:[%s6236_s1 + $0x30] sm:$0xff] (!%p271_p9)  ;;  %v360_v18 = vld [vmem:[%s6236_s1 + $0x38] sm:$0xff] (!%p271_p9)  ;;  %v4645_v20 = vpack.c.bf16 (!%p271_p9), %v727_v16, %v726_v15  ;;  %v5049_v56 = vld [vmem:[%s6237_s2] ss:$0 sm:$0xff] (!%p271_p9)  ;;  %vm4033_vm8 = vcmask (!%p271_p9), 523712   ;;  %vm4040_vm9 = vcmask (!%p271_p9), 589312  }
  0x14   : > { %4626 = vmatprep.subr.bf16.mxu0 (!%p271_p9), %v4625_v5  ;;  %4638 = vmatprep.subr.bf16.mxu1 (!%p271_p9), %v4637_v12  ;;  %v4633_v21 = vpack.c.bf16 (!%p271_p9), %v360_v18, %v359_v17  ;;  %v728_v53 = vld [vmem:[%s6238_s3 + $0x30] sm:$0xff] (!%p271_p9)  ;;  %v729_v54 = vld [vmem:[%s6238_s3 + $0x38] sm:$0xff] (!%p271_p9)  ;;  %vm4047_vm10 = vcmask (!%p271_p9), 654912   ;;  %vm4054_vm11 = vcmask (!%p271_p9), 720512   ;;  %vm4061_vm12 = vcmask (!%p271_p9), 786112   ;;  %s4335_s27 = sshll.u32 (!%p271_p9), %s299_s25, 1 }
  0x15   : > { %4640 = vmatpush3.bf16.msra.mxu1 (!%p271_p9), %v4637_v12  ;;  %v4649_v55 = vpack.c.bf16 (!%p271_p9), %v729_v54, %v728_v53  ;;  %vm4068_vm13 = vcmask (!%p271_p9), 851712   ;;  %vm4075_vm14 = vcmask (!%p271_p9), 917312   ;;  %vm4082_vm15 = vcmask (!%p271_p9), 982912   ;;  %s301_s28 = scalar_lea.vmem (!%p271_p9), [#allocation3], %s4335_s27  ;;  %s4224_s19 = scalar_lea.sflag (!%p271_p9), [#allocation4], %s299_s25 }
  0x16   : > { %4642 = vmatprep.subr.bf16.mxu1 (!%p271_p9), %v4641_v14  ;;  %s4243_s11 = sshll.u32 (!%p271_p9), %s301_s28, 4  ;;  %s6193_s11 = int_to_ptr.vmem [resolvable:$true] %s4243_s11 }
  0x17   : > { %s4945_s18 = scalar_select %p310_p10, %s4929_s24, 63  ;;  %4628 = vmatpush3.bf16.msra.mxu0 %v4625_v5 }
  0x18   : > { %4630 = vmatprep.subr.bf16.mxu0 %v4629_v13 }
  0x19   : > { %s4337_s26 = sshll.u32 %s4945_s18, 3  ;;  %4644 = vmatpush3.bf16.msra.mxu1 %v4641_v14  ;;  %s4826_s18 = smov [#allocation3]  }
  0x1a   : > { %s4974_s23 = scalar_lea.vmem %s6235_s0, %s4337_s26  ;;  %4646 = vmatprep.subr.bf16.mxu1 %v4645_v20  ;;  %s5057_s20 = scalar_lea.vmem %s6243_s8, %s4337_s26 }
  0x1b   : > { %v321_v19 = vld [vmem:[%s4974_s23] sm:$0xff]  ;;  %4632 = vmatpush3.bf16.msra.mxu0 %v4629_v13  ;;  %v322_v22 = vld [vmem:[%s4974_s23 + $0x8] sm:$0xff]  ;;  %v323_v23 = vld [vmem:[%s4974_s23 + $0x10] sm:$0xff]  ;;  %s4764_s26 = sshll.u32 %s4826_s18, 4  ;;  %s4765_s26 = int_to_ptr.vmem [resolvable:$false] %s4764_s26 }
  0x1c   : > { %4509 = vmatprep.mubr.msk.f32.mxu0 %vm368_vm0, %v321_v19  ;;  %4634 = vmatprep.subr.bf16.mxu0 %v4633_v21  ;;  %v324_v24 = vld [vmem:[%s4974_s23 + $0x18] sm:$0xff]  ;;  %v325_v25 = vld [vmem:[%s4974_s23 + $0x20] sm:$0xff]  ;;  %v326_v26 = vld [vmem:[%s4974_s23 + $0x28] sm:$0xff]  ;;  %s4766_s21 = scalar_lea.vmem %s4765_s26, 64  ;;  %p4767_p0 = scmp.lt.s32.totalorder %s6193_s11, %s4765_s26 }
  0x1d   : > { %4648 = vmatpush3.bf16.msra.mxu1 %v4645_v20  ;;  %v327_v27 = vld [vmem:[%s4974_s23 + $0x30] sm:$0xff]  ;;  %v328_v28 = vld [vmem:[%s4974_s23 + $0x38] sm:$0xff]  ;;  %v329_v29 = vld [vmem:[%s4974_s23 + $0x40] sm:$0xff] }
  0x1e   : > { %v330_v30 = vld [vmem:[%s4974_s23 + $0x48] sm:$0xff]  ;;  %v331_v31 = vld [vmem:[%s4974_s23 + $0x50] sm:$0xff]  ;;  %v332_v32 = vld [vmem:[%s4974_s23 + $0x58] sm:$0xff]  ;;  %4650 = vmatprep.subr.bf16.mxu1 %v4649_v55 }
  0x1f   : > { %4636 = vmatpush3.bf16.msra.mxu0 %v4633_v21  ;;  %v333_v33 = vld [vmem:[%s4974_s23 + $0x60] sm:$0xff]  ;;  %v334_v34 = vld [vmem:[%s4974_s23 + $0x68] sm:$0xff]  ;;  %v335_v35 = vld [vmem:[%s4974_s23 + $0x70] sm:$0xff] }
  0x20   : > { %v336_v36 = vld [vmem:[%s4974_s23 + $0x78] sm:$0xff]  ;;  %v337_v37 = vld [vmem:[%s4974_s23 + $0x80] sm:$0xff]  ;;  %v338_v38 = vld [vmem:[%s4974_s23 + $0x88] sm:$0xff] }
  0x21   : > { %v339_v39 = vld [vmem:[%s4974_s23 + $0x90] sm:$0xff]  ;;  %v340_v40 = vld [vmem:[%s4974_s23 + $0x98] sm:$0xff]  ;;  %v341_v41 = vld [vmem:[%s4974_s23 + $0xa0] sm:$0xff]  ;;  %4652 = vmatpush3.bf16.msra.mxu1 %v4649_v55 }
  0x22   : > { %4510 = vmatmul.mubr.msk.f32.vlgmr.msra.gmra.mrb[0].mxu0 %vm368_vm0, %v322_v22  ;;  %v342_v42 = vld [vmem:[%s4974_s23 + $0xa8] sm:$0xff]  ;;  %v343_v43 = vld [vmem:[%s4974_s23 + $0xb0] sm:$0xff]  ;;  %v344_v44 = vld [vmem:[%s4974_s23 + $0xb8] sm:$0xff] }
  0x23   : > { %4512 = vmatprep.mubr.msk.f32.mxu0 %vm368_vm0, %v323_v23  ;;  %v345_v45 = vld [vmem:[%s4974_s23 + $0xc0] sm:$0xff]  ;;  %v346_v46 = vld [vmem:[%s4974_s23 + $0xc8] sm:$0xff]  ;;  %v347_v47 = vld [vmem:[%s4974_s23 + $0xd0] sm:$0xff] }
  0x24   : > { %v348_v48 = vld [vmem:[%s4974_s23 + $0xd8] sm:$0xff]  ;;  %v349_v49 = vld [vmem:[%s4974_s23 + $0xe0] sm:$0xff]  ;;  %v350_v50 = vld [vmem:[%s4974_s23 + $0xe8] sm:$0xff] }
  0x25   : > { %v351_v51 = vld [vmem:[%s4974_s23 + $0xf0] sm:$0xff]  ;;  %v352_v52 = vld [vmem:[%s4974_s23 + $0xf8] sm:$0xff]  ;;  %s1226_s23 = sld [smem:[#allocation2]] }
  0x26   : > { %4513 = vmatmul.mubr.msk.f32.gmra.mrb[2].mxu0 %vm368_vm0, %v324_v24 }
  0x27   : > { %4515 = vmatprep.mubr.msk.f32.mxu0 %vm368_vm0, %v325_v25 }
  0x2a   : > { %4516 = vmatmul.mubr.msk.f32.gmra.mrb[4].mxu0 %vm368_vm0, %v326_v26 }
  0x2b   : > { %4518 = vmatprep.mubr.msk.f32.mxu0 %vm368_vm0, %v327_v27 }
  0x2e   : > { %4519 = vmatmul.mubr.msk.f32.gmra.mrb[6].mxu0 %vm368_vm0, %v328_v28 }
  0x2f   : > { %4521 = vmatprep.mubr.msk.f32.mxu0 %vm368_vm0, %v329_v29 }
  0x32   : > { %4522 = vmatmul.mubr.msk.f32.gmra.mrb[8].mxu0 %vm368_vm0, %v330_v30 }
  0x33   : > { %4524 = vmatprep.mubr.msk.f32.mxu0 %vm368_vm0, %v331_v31 }
  0x36   : > { %4525 = vmatmul.mubr.msk.f32.gmra.mrb[10].mxu0 %vm368_vm0, %v332_v32 }
  0x37   : > { %4527 = vmatprep.mubr.msk.f32.mxu0 %vm368_vm0, %v333_v33 }
  0x3a   : > { %4528 = vmatmul.mubr.msk.f32.gmra.mrb[12].mxu0 %vm368_vm0, %v334_v34 }
  0x3b   : > { %4530 = vmatprep.mubr.msk.f32.mxu0 %vm368_vm0, %v335_v35 }
  0x3e   : > { %4531 = vmatmul.mubr.msk.f32.gmra.mrb[14].mxu0 %vm368_vm0, %v336_v36 }
  0x3f   : > { %4533 = vmatprep.mubr.msk.f32.mxu0 %vm368_vm0, %v337_v37 }
  0x42   : > { %4534 = vmatmul.mubr.msk.f32.gmra.mrb[16].mxu0 %vm368_vm0, %v338_v38 }
  0x43   : > { %4536 = vmatprep.mubr.msk.f32.mxu0 %vm368_vm0, %v339_v39 }
  0x46   : > { %4537 = vmatmul.mubr.msk.f32.gmra.mrb[18].mxu0 %vm368_vm0, %v340_v40 }
  0x47   : > { %4539 = vmatprep.mubr.msk.f32.mxu0 %vm368_vm0, %v341_v41 }
  0x4a   : > { %4540 = vmatmul.mubr.msk.f32.gmra.mrb[20].mxu0 %vm368_vm0, %v342_v42 }
  0x4b   : > { %4542 = vmatprep.mubr.msk.f32.mxu0 %vm368_vm0, %v343_v43 }
  0x4e   : > { %4543 = vmatmul.mubr.msk.f32.gmra.mrb[22].mxu0 %vm368_vm0, %v344_v44 }
  0x4f   : > { %4545 = vmatprep.mubr.msk.f32.mxu0 %vm368_vm0, %v345_v45 }
  0x52   : > { %4546 = vmatmul.mubr.msk.f32.gmra.mrb[24].mxu0 %vm368_vm0, %v346_v46 }
  0x53   : > { %4548 = vmatprep.mubr.msk.f32.mxu0 %vm368_vm0, %v347_v47 }
  0x56   : > { %4549 = vmatmul.mubr.msk.f32.gmra.mrb[26].mxu0 %vm368_vm0, %v348_v48 }
  0x57   : > { %4551 = vmatprep.mubr.msk.f32.mxu0 %vm368_vm0, %v349_v49 }
  0x5a   : > { %4552 = vmatmul.mubr.msk.f32.gmra.mrb[28].mxu0 %vm368_vm0, %v350_v50 }
  0x5b   : > { %4554 = vmatprep.mubr.msk.f32.mxu0 %vm368_vm0, %v351_v51 }
  0x5e   : > { %4555 = vmatmul.mubr.msk.f32.gmra.mrb[30].mxu0 %vm368_vm0, %v352_v52 }
  0xf5   : > { %v4511_v57 = vpop.f32.mrb[0].mxu0 }
  0xf6   : > { %v537_v58 = vadd.f32 %v4511_v57, %v5049_v56  ;;  %v531_v59 = vpop.f32.mrb[1].mxu0 }
  0xf7   : > { %v532_v60 = vadd.f32 %v5049_v56, %v531_v59 }
  0xf8   : > { %v691_v61 = vmax.f32 %v537_v58, 0.0 }
  0xf9   : > { %v690_v62 = vmax.f32 %v532_v60, 0.0  ;;  %v4514_v63 = vpop.f32.mrb[2].mxu0 }
  0xfa   : > { %4192 = vst.msk [vmem:[%s5057_s20 + $0x8] sm:$0xff] %vm368_vm0, %v691_v61  ;;  %v547_v0 = vadd.f32 %v4514_v63, %v5049_v56  ;;  %v541_v1 = vpop.f32.mrb[3].mxu0 }
  0xfb   : > { %4191 = vst.msk [vmem:[%s5057_s20] sm:$0xff] %vm368_vm0, %v690_v62  ;;  %v542_v2 = vadd.f32 %v5049_v56, %v541_v1  ;;  %4573 = vmatprep.mubr.msk.f32.mxu1 %vm368_vm0, %v690_v62 }
  0xfc   : > { %v693_v3 = vmax.f32 %v547_v0, 0.0  ;;  %4574 = vmatmul.mubr.msk.f32.vlgmr.msra.gmra.mrb[0].mxu1 %vm368_vm0, %v691_v61 }
  0xfd   : > { %v692_v4 = vmax.f32 %v542_v2, 0.0  ;;  %v4517_v5 = vpop.f32.mrb[4].mxu0 }
  0xfe   : > { %4194 = vst.msk [vmem:[%s5057_s20 + $0x18] sm:$0xff] %vm368_vm0, %v693_v3  ;;  %v557_v6 = vadd.f32 %v4517_v5, %v5049_v56  ;;  %v551_v7 = vpop.f32.mrb[5].mxu0 }
  0xff   : > { %4193 = vst.msk [vmem:[%s5057_s20 + $0x10] sm:$0xff] %vm368_vm0, %v692_v4  ;;  %v552_v8 = vadd.f32 %v5049_v56, %v551_v7  ;;  %4576 = vmatprep.mubr.msk.f32.mxu1 %vm368_vm0, %v692_v4 }
 0x100   : > { %v695_v9 = vmax.f32 %v557_v6, 0.0  ;;  %4577 = vmatmul.mubr.msk.f32.gmra.mrb[2].mxu1 %vm368_vm0, %v693_v3 }
 0x101   : > { %v694_v10 = vmax.f32 %v552_v8, 0.0  ;;  %v4520_v11 = vpop.f32.mrb[6].mxu0 }
 0x102   : > { %4196 = vst.msk [vmem:[%s5057_s20 + $0x28] sm:$0xff] %vm368_vm0, %v695_v9  ;;  %v567_v12 = vadd.f32 %v4520_v11, %v5049_v56  ;;  %v561_v13 = vpop.f32.mrb[7].mxu0 }
 0x103   : > { %4195 = vst.msk [vmem:[%s5057_s20 + $0x20] sm:$0xff] %vm368_vm0, %v694_v10  ;;  %v562_v14 = vadd.f32 %v5049_v56, %v561_v13  ;;  %4579 = vmatprep.mubr.msk.f32.mxu1 %vm368_vm0, %v694_v10 }
 0x104   : > { %v697_v15 = vmax.f32 %v567_v12, 0.0  ;;  %4580 = vmatmul.mubr.msk.f32.gmra.mrb[4].mxu1 %vm368_vm0, %v695_v9 }
 0x105   : > { %v696_v16 = vmax.f32 %v562_v14, 0.0  ;;  %v4523_v17 = vpop.f32.mrb[8].mxu0 }
 0x106   : > { %4198 = vst.msk [vmem:[%s5057_s20 + $0x38] sm:$0xff] %vm368_vm0, %v697_v15  ;;  %v577_v18 = vadd.f32 %v4523_v17, %v5049_v56  ;;  %v571_v19 = vpop.f32.mrb[9].mxu0 }
 0x107   : > { %4197 = vst.msk [vmem:[%s5057_s20 + $0x30] sm:$0xff] %vm368_vm0, %v696_v16  ;;  %v572_v20 = vadd.f32 %v5049_v56, %v571_v19  ;;  %4582 = vmatprep.mubr.msk.f32.mxu1 %vm368_vm0, %v696_v16 }
 0x108   : > { %v699_v21 = vmax.f32 %v577_v18, 0.0  ;;  %4583 = vmatmul.mubr.msk.f32.gmra.mrb[6].mxu1 %vm368_vm0, %v697_v15 }
 0x109   : > { %v698_v22 = vmax.f32 %v572_v20, 0.0  ;;  %v4526_v23 = vpop.f32.mrb[10].mxu0 }
 0x10a   : > { %4200 = vst.msk [vmem:[%s5057_s20 + $0x48] sm:$0xff] %vm368_vm0, %v699_v21  ;;  %v587_v24 = vadd.f32 %v4526_v23, %v5049_v56  ;;  %v581_v25 = vpop.f32.mrb[11].mxu0 }
 0x10b   : > { %4199 = vst.msk [vmem:[%s5057_s20 + $0x40] sm:$0xff] %vm368_vm0, %v698_v22  ;;  %v582_v26 = vadd.f32 %v5049_v56, %v581_v25  ;;  %4585 = vmatprep.mubr.msk.f32.mxu1 %vm368_vm0, %v698_v22 }
 0x10c   : > { %v701_v27 = vmax.f32 %v587_v24, 0.0  ;;  %4586 = vmatmul.mubr.msk.f32.gmra.mrb[8].mxu1 %vm368_vm0, %v699_v21 }
 0x10d   : > { %v700_v28 = vmax.f32 %v582_v26, 0.0  ;;  %v4529_v29 = vpop.f32.mrb[12].mxu0  ;;  %v5189_v26 = vld [vmem:[%s6239_s4] ss:$0 sm:$0xff] }
 0x10e   : > { %4202 = vst.msk [vmem:[%s5057_s20 + $0x58] sm:$0xff] %vm368_vm0, %v701_v27  ;;  %v597_v30 = vadd.f32 %v4529_v29, %v5049_v56  ;;  %v591_v31 = vpop.f32.mrb[13].mxu0 }
 0x10f   : > { %4201 = vst.msk [vmem:[%s5057_s20 + $0x50] sm:$0xff] %vm368_vm0, %v700_v28  ;;  %v592_v32 = vadd.f32 %v5049_v56, %v591_v31  ;;  %4588 = vmatprep.mubr.msk.f32.mxu1 %vm368_vm0, %v700_v28 }
 0x110   : > { %v703_v33 = vmax.f32 %v597_v30, 0.0  ;;  %4589 = vmatmul.mubr.msk.f32.gmra.mrb[10].mxu1 %vm368_vm0, %v701_v27 }
 0x111   : > { %v702_v34 = vmax.f32 %v592_v32, 0.0  ;;  %v4532_v35 = vpop.f32.mrb[14].mxu0 }
 0x112   : > { %4204 = vst.msk [vmem:[%s5057_s20 + $0x68] sm:$0xff] %vm368_vm0, %v703_v33  ;;  %v607_v36 = vadd.f32 %v4532_v35, %v5049_v56  ;;  %v601_v37 = vpop.f32.mrb[15].mxu0 }
 0x113   : > { %4203 = vst.msk [vmem:[%s5057_s20 + $0x60] sm:$0xff] %vm368_vm0, %v702_v34  ;;  %v602_v38 = vadd.f32 %v5049_v56, %v601_v37  ;;  %4591 = vmatprep.mubr.msk.f32.mxu1 %vm368_vm0, %v702_v34 }
 0x114   : > { %v705_v39 = vmax.f32 %v607_v36, 0.0  ;;  %4592 = vmatmul.mubr.msk.f32.gmra.mrb[12].mxu1 %vm368_vm0, %v703_v33 }
 0x115   : > { %v704_v40 = vmax.f32 %v602_v38, 0.0  ;;  %v4535_v41 = vpop.f32.mrb[16].mxu0  ;;  %v5200_v38 = vld [vmem:[%s6240_s5] ss:$0 sm:$0xff] }
 0x116   : > { %4206 = vst.msk [vmem:[%s5057_s20 + $0x78] sm:$0xff] %vm368_vm0, %v705_v39  ;;  %v617_v42 = vadd.f32 %v4535_v41, %v5049_v56  ;;  %v611_v43 = vpop.f32.mrb[17].mxu0 }
 0x117   : > { %4205 = vst.msk [vmem:[%s5057_s20 + $0x70] sm:$0xff] %vm368_vm0, %v704_v40  ;;  %v612_v44 = vadd.f32 %v5049_v56, %v611_v43  ;;  %4594 = vmatprep.mubr.msk.f32.mxu1 %vm368_vm0, %v704_v40 }
 0x118   : > { %v707_v45 = vmax.f32 %v617_v42, 0.0  ;;  %4595 = vmatmul.mubr.msk.f32.gmra.mrb[14].mxu1 %vm368_vm0, %v705_v39 }
 0x119   : > { %v706_v46 = vmax.f32 %v612_v44, 0.0  ;;  %v4538_v47 = vpop.f32.mrb[18].mxu0 }
 0x11a   : > { %4208 = vst.msk [vmem:[%s5057_s20 + $0x88] sm:$0xff] %vm368_vm0, %v707_v45  ;;  %v627_v48 = vadd.f32 %v4538_v47, %v5049_v56  ;;  %v621_v49 = vpop.f32.mrb[19].mxu0 }
 0x11b   : > { %4207 = vst.msk [vmem:[%s5057_s20 + $0x80] sm:$0xff] %vm368_vm0, %v706_v46  ;;  %v622_v50 = vadd.f32 %v5049_v56, %v621_v49  ;;  %4597 = vmatprep.mubr.msk.f32.mxu1 %vm368_vm0, %v706_v46 }
 0x11c   : > { %v709_v51 = vmax.f32 %v627_v48, 0.0  ;;  %4598 = vmatmul.mubr.msk.f32.gmra.mrb[16].mxu1 %vm368_vm0, %v707_v45 }
 0x11d   : > { %v708_v52 = vmax.f32 %v622_v50, 0.0  ;;  %v4541_v53 = vpop.f32.mrb[20].mxu0 }
 0x11e   : > { %4210 = vst.msk [vmem:[%s5057_s20 + $0x98] sm:$0xff] %vm368_vm0, %v709_v51  ;;  %v637_v54 = vadd.f32 %v4541_v53, %v5049_v56  ;;  %v631_v55 = vpop.f32.mrb[21].mxu0 }
 0x11f   : > { %4209 = vst.msk [vmem:[%s5057_s20 + $0x90] sm:$0xff] %vm368_vm0, %v708_v52  ;;  %v632_v57 = vadd.f32 %v5049_v56, %v631_v55  ;;  %4600 = vmatprep.mubr.msk.f32.mxu1 %vm368_vm0, %v708_v52 }
 0x120   : > { %v711_v58 = vmax.f32 %v637_v54, 0.0  ;;  %4601 = vmatmul.mubr.msk.f32.gmra.mrb[18].mxu1 %vm368_vm0, %v709_v51 }
 0x121   : > { %v710_v59 = vmax.f32 %v632_v57, 0.0  ;;  %v4544_v60 = vpop.f32.mrb[22].mxu0 }
 0x122   : > { %4212 = vst.msk [vmem:[%s5057_s20 + $0xa8] sm:$0xff] %vm368_vm0, %v711_v58  ;;  %v647_v61 = vadd.f32 %v4544_v60, %v5049_v56  ;;  %v641_v62 = vpop.f32.mrb[23].mxu0 }
 0x123   : > { %4211 = vst.msk [vmem:[%s5057_s20 + $0xa0] sm:$0xff] %vm368_vm0, %v710_v59  ;;  %v642_v63 = vadd.f32 %v5049_v56, %v641_v62  ;;  %4603 = vmatprep.mubr.msk.f32.mxu1 %vm368_vm0, %v710_v59 }
 0x124   : > { %v713_v0 = vmax.f32 %v647_v61, 0.0  ;;  %4604 = vmatmul.mubr.msk.f32.gmra.mrb[20].mxu1 %vm368_vm0, %v711_v58 }
 0x125   : > { %v712_v1 = vmax.f32 %v642_v63, 0.0  ;;  %v4547_v2 = vpop.f32.mrb[24].mxu0 }
 0x126   : > { %4214 = vst.msk [vmem:[%s5057_s20 + $0xb8] sm:$0xff] %vm368_vm0, %v713_v0  ;;  %v657_v3 = vadd.f32 %v4547_v2, %v5049_v56  ;;  %v651_v4 = vpop.f32.mrb[25].mxu0 }
 0x127   : > { %4213 = vst.msk [vmem:[%s5057_s20 + $0xb0] sm:$0xff] %vm368_vm0, %v712_v1  ;;  %v652_v5 = vadd.f32 %v5049_v56, %v651_v4  ;;  %4606 = vmatprep.mubr.msk.f32.mxu1 %vm368_vm0, %v712_v1 }
 0x128   : > { %v715_v6 = vmax.f32 %v657_v3, 0.0  ;;  %4607 = vmatmul.mubr.msk.f32.gmra.mrb[22].mxu1 %vm368_vm0, %v713_v0 }
 0x129   : > { %v714_v7 = vmax.f32 %v652_v5, 0.0  ;;  %v4550_v8 = vpop.f32.mrb[26].mxu0 }
 0x12a   : > { %4216 = vst.msk [vmem:[%s5057_s20 + $0xc8] sm:$0xff] %vm368_vm0, %v715_v6  ;;  %v667_v9 = vadd.f32 %v4550_v8, %v5049_v56  ;;  %v661_v10 = vpop.f32.mrb[27].mxu0 }
 0x12b   : > { %4215 = vst.msk [vmem:[%s5057_s20 + $0xc0] sm:$0xff] %vm368_vm0, %v714_v7  ;;  %v662_v11 = vadd.f32 %v5049_v56, %v661_v10  ;;  %4609 = vmatprep.mubr.msk.f32.mxu1 %vm368_vm0, %v714_v7 }
 0x12c   : > { %v717_v12 = vmax.f32 %v667_v9, 0.0  ;;  %4610 = vmatmul.mubr.msk.f32.gmra.mrb[24].mxu1 %vm368_vm0, %v715_v6 }
 0x12d   : > { %v716_v13 = vmax.f32 %v662_v11, 0.0  ;;  %v4553_v14 = vpop.f32.mrb[28].mxu0 }
 0x12e   : > { %4218 = vst.msk [vmem:[%s5057_s20 + $0xd8] sm:$0xff] %vm368_vm0, %v717_v12  ;;  %v677_v15 = vadd.f32 %v4553_v14, %v5049_v56  ;;  %v671_v16 = vpop.f32.mrb[29].mxu0 }
 0x12f   : > { %4217 = vst.msk [vmem:[%s5057_s20 + $0xd0] sm:$0xff] %vm368_vm0, %v716_v13  ;;  %4612 = vmatprep.mubr.msk.f32.mxu1 %vm368_vm0, %v716_v13  ;;  %v672_v17 = vadd.f32 %v5049_v56, %v671_v16 }
 0x130   : > { %4613 = vmatmul.mubr.msk.f32.gmra.mrb[26].mxu1 %vm368_vm0, %v717_v12  ;;  %v719_v18 = vmax.f32 %v677_v15, 0.0 }
 0x131   : > { %v718_v19 = vmax.f32 %v672_v17, 0.0  ;;  %v4556_v20 = vpop.f32.mrb[30].mxu0 }
 0x132   : > { %4220 = vst.msk [vmem:[%s5057_s20 + $0xe8] sm:$0xff] %vm368_vm0, %v719_v18  ;;  %v687_v21 = vadd.f32 %v4556_v20, %v5049_v56  ;;  %v681_v22 = vpop.f32.mrb[31].mxu0 }
 0x133   : > { %4219 = vst.msk [vmem:[%s5057_s20 + $0xe0] sm:$0xff] %vm368_vm0, %v718_v19  ;;  %4615 = vmatprep.mubr.msk.f32.mxu1 %vm368_vm0, %v718_v19  ;;  %v682_v23 = vadd.f32 %v5049_v56, %v681_v22 }
 0x134   : > { %v721_v24 = vmax.f32 %v687_v21, 0.0  ;;  %4616 = vmatmul.mubr.msk.f32.gmra.mrb[28].mxu1 %vm368_vm0, %v719_v18 }
 0x135   : > { %v720_v25 = vmax.f32 %v682_v23, 0.0 }
 0x136   : > { %4222 = vst.msk [vmem:[%s5057_s20 + $0xf8] sm:$0xff] %vm368_vm0, %v721_v24 }
 0x137   : > { %4221 = vst.msk [vmem:[%s5057_s20 + $0xf0] sm:$0xff] %vm368_vm0, %v720_v25  ;;  %4618 = vmatprep.mubr.msk.f32.mxu1 %vm368_vm0, %v720_v25  ;;  %s4760_s20 = scalar_lea.vmem %s6193_s11, 32 }
 0x138   : > { %4619 = vmatmul.mubr.msk.f32.gmra.mrb[30].mxu1 %vm368_vm0, %v721_v24  ;;  %vm4089_vm0 = vcmask 1048512   ;;  %p4761_p11 = scmp.ne.s32.totalorder %s6193_s11, %s4760_s20  ;;  %p4768_p1 = scmp.lt.s32.totalorder %s4766_s21, %s4760_s20 }
 0x13a   : > { %p4762_p12 = pnand %p4761_p11, %p4910_p5  ;;  %p4769_p2 = por %p4768_p1, %p4767_p0 }
 0x13c   : > { %p4763_p13 = pneg %p4762_p12 }
 0x13e   : > { %p4770_p3 = pnand %p4769_p2, %p4763_p13 }
 0x1cf   : > { %v4575_v27 = vpop.f32.mrb[0].mxu1 }
 0x1d0   : > { %v905_v56 = vadd.f32 %v4575_v27, %v5189_v26  ;;  %v899_v28 = vpop.f32.mrb[1].mxu1 }
 0x1d1   : > { %v900_v29 = vadd.f32 %v5189_v26, %v899_v28 }
 0x1d2   : > { %4696 = vtanh.f32 %v905_v56 }
 0x1d3   : > { %4698 = vtanh.f32 %v900_v29  ;;  %v4578_v30 = vpop.f32.mrb[2].mxu1 }
 0x1d4   : > { %v915_v31 = vadd.f32 %v4578_v30, %v5189_v26  ;;  %v909_v32 = vpop.f32.mrb[3].mxu1 }
 0x1d5   : > { %v910_v33 = vadd.f32 %v5189_v26, %v909_v32 }
 0x1d6   : > { %4700 = vtanh.f32 %v915_v31 }
 0x1d7   : > { %4702 = vtanh.f32 %v910_v33  ;;  %v4581_v34 = vpop.f32.mrb[4].mxu1 }
 0x1d8   : > { %v925_v35 = vadd.f32 %v4581_v34, %v5189_v26  ;;  %v919_v36 = vpop.f32.mrb[5].mxu1 }
 0x1d9   : > { %v920_v37 = vadd.f32 %v5189_v26, %v919_v36 }
 0x1da   : > { %4704 = vtanh.f32 %v925_v35 }
 0x1db   : > { %4706 = vtanh.f32 %v920_v37  ;;  %v4584_v39 = vpop.f32.mrb[6].mxu1 }
 0x1dc   : > { %v4697_v40 = vpop.eup %4696  ;;  %v935_v41 = vadd.f32 %v4584_v39, %v5189_v26  ;;  %v929_v42 = vpop.f32.mrb[7].mxu1 }
 0x1dd   : > { %v4699_v43 = vpop.eup %4698  ;;  %v930_v44 = vadd.f32 %v5189_v26, %v929_v42  ;;  %v1098_v45 = vmul.f32 %v4697_v40, %v5200_v38 }
 0x1de   : > { %4708 = vtanh.f32 %v935_v41  ;;  %v1097_v48 = vmul.f32 %v4699_v43, %v5200_v38 }
 0x1df   : > { %4710 = vtanh.f32 %v930_v44  ;;  %v1133_v46 = vsel %vm1129_vm1, %v1098_v45, 0.0  ;;  %v4587_v47 = vpop.f32.mrb[8].mxu1 }
 0x1e0   : > { %v4701_v49 = vpop.eup %4700  ;;  %1134 = vadd.xlane.f32.xlu0 %v1133_v46  ;;  %v945_v50 = vadd.f32 %v4587_v47, %v5189_v26  ;;  %v939_v51 = vpop.f32.mrb[9].mxu1  ;;  %v1130_v58 = vsel %vm1129_vm1, %v1097_v48, 0.0 }
 0x1e1   : > { %v4703_v52 = vpop.eup %4702  ;;  %v940_v53 = vadd.f32 %v5189_v26, %v939_v51  ;;  %v1100_v54 = vmul.f32 %v4701_v49, %v5200_v38 }
 0x1e2   : > { %4712 = vtanh.f32 %v945_v50  ;;  %v1099_v59 = vmul.f32 %v4703_v52, %v5200_v38 }
 0x1e3   : > { %4714 = vtanh.f32 %v940_v53  ;;  %v1139_v55 = vsel %vm1129_vm1, %v1100_v54, 0.0  ;;  %v4590_v57 = vpop.f32.mrb[10].mxu1 }
 0x1e4   : > { %v4705_v60 = vpop.eup %4704  ;;  %1140 = vadd.xlane.f32.xlu1 %v1139_v55  ;;  %v955_v61 = vadd.f32 %v4590_v57, %v5189_v26  ;;  %1131 = vadd.xlane.f32.xlu0 %v1130_v58  ;;  %v949_v62 = vpop.f32.mrb[11].mxu1  ;;  %v1136_v3 = vsel %vm1129_vm1, %v1099_v59, 0.0  ;;  %v4824_v57 = vmov 0  }
 0x1e5   : > { %v4707_v63 = vpop.eup %4706  ;;  %v950_v0 = vadd.f32 %v5189_v26, %v949_v62  ;;  %v1102_v4 = vmul.f32 %v4705_v60, %v5200_v38  ;;  %4694 = vset.pattern.permute.xlu1 %v4824_v57  ;;  %4695 = vset.pattern.permute.xlu0 %v4824_v57 }
 0x1e6   : > { %4716 = vtanh.f32 %v955_v61  ;;  %v1101_v1 = vmul.f32 %v4707_v63, %v5200_v38 }
 0x1e7   : > { %4718 = vtanh.f32 %v950_v0  ;;  %v4593_v2 = vpop.f32.mrb[12].mxu1  ;;  %v1145_v13 = vsel %vm1129_vm1, %v1102_v4, 0.0 }
 0x1e8   : > { %v4709_v5 = vpop.eup %4708  ;;  %v965_v6 = vadd.f32 %v4593_v2, %v5189_v26  ;;  %1137 = vadd.xlane.f32.xlu1 %v1136_v3  ;;  %v959_v7 = vpop.f32.mrb[13].mxu1  ;;  %v1142_v8 = vsel %vm1129_vm1, %v1101_v1, 0.0 }
 0x1e9   : > { %v4711_v9 = vpop.eup %4710  ;;  %v960_v10 = vadd.f32 %v5189_v26, %v959_v7  ;;  %1143 = vadd.xlane.f32.xlu0 %v1142_v8  ;;  %v1104_v14 = vmul.f32 %v4709_v5, %v5200_v38 }
 0x1ea   : > { %4720 = vtanh.f32 %v965_v6  ;;  %v1103_v11 = vmul.f32 %v4711_v9, %v5200_v38 }
 0x1eb   : > { %4722 = vtanh.f32 %v960_v10  ;;  %v4596_v12 = vpop.f32.mrb[14].mxu1  ;;  %v1151_v23 = vsel %vm1129_vm1, %v1104_v14, 0.0 }
 0x1ec   : > { %v4713_v15 = vpop.eup %4712  ;;  %v975_v16 = vadd.f32 %v4596_v12, %v5189_v26  ;;  %1146 = vadd.xlane.f32.xlu1 %v1145_v13  ;;  %v969_v17 = vpop.f32.mrb[15].mxu1  ;;  %v1148_v18 = vsel %vm1129_vm1, %v1103_v11, 0.0 }
 0x1ed   : > { %v4715_v19 = vpop.eup %4714  ;;  %v970_v20 = vadd.f32 %v5189_v26, %v969_v17  ;;  %1149 = vadd.xlane.f32.xlu0 %v1148_v18  ;;  %v1106_v24 = vmul.f32 %v4713_v15, %v5200_v38 }
 0x1ee   : > { %4724 = vtanh.f32 %v975_v16  ;;  %v1105_v21 = vmul.f32 %v4715_v19, %v5200_v38 }
 0x1ef   : > { %4726 = vtanh.f32 %v970_v20  ;;  %v4599_v22 = vpop.f32.mrb[16].mxu1  ;;  %v1157_v33 = vsel %vm1129_vm1, %v1106_v24, 0.0 }
 0x1f0   : > { %v4717_v25 = vpop.eup %4716  ;;  %v985_v27 = vadd.f32 %v4599_v22, %v5189_v26  ;;  %1152 = vadd.xlane.f32.xlu1 %v1151_v23  ;;  %v979_v56 = vpop.f32.mrb[17].mxu1  ;;  %v1154_v28 = vsel %vm1129_vm1, %v1105_v21, 0.0 }
 0x1f1   : > { %v4719_v29 = vpop.eup %4718  ;;  %v980_v30 = vadd.f32 %v5189_v26, %v979_v56  ;;  %1155 = vadd.xlane.f32.xlu0 %v1154_v28  ;;  %v1108_v34 = vmul.f32 %v4717_v25, %v5200_v38 }
 0x1f2   : > { %4728 = vtanh.f32 %v985_v27  ;;  %v1107_v31 = vmul.f32 %v4719_v29, %v5200_v38 }
 0x1f3   : > { %4730 = vtanh.f32 %v980_v30  ;;  %v4602_v32 = vpop.f32.mrb[18].mxu1  ;;  %v1163_v44 = vsel %vm1129_vm1, %v1108_v34, 0.0 }
 0x1f4   : > { %v4721_v35 = vpop.eup %4720  ;;  %v995_v36 = vadd.f32 %v4602_v32, %v5189_v26  ;;  %1158 = vadd.xlane.f32.xlu1 %v1157_v33  ;;  %v989_v37 = vpop.f32.mrb[19].mxu1  ;;  %v1160_v39 = vsel %vm1129_vm1, %v1107_v31, 0.0 }
 0x1f5   : > { %v4723_v40 = vpop.eup %4722  ;;  %v990_v41 = vadd.f32 %v5189_v26, %v989_v37  ;;  %1161 = vadd.xlane.f32.xlu0 %v1160_v39  ;;  %v1110_v45 = vmul.f32 %v4721_v35, %v5200_v38 }
 0x1f6   : > { %4732 = vtanh.f32 %v995_v36  ;;  %v1109_v42 = vmul.f32 %v4723_v40, %v5200_v38 }
 0x1f7   : > { %4734 = vtanh.f32 %v990_v41  ;;  %v4605_v43 = vpop.f32.mrb[20].mxu1  ;;  %v1169_v54 = vsel %vm1129_vm1, %v1110_v45, 0.0 }
 0x1f8   : > { %v4725_v46 = vpop.eup %4724  ;;  %v1005_v47 = vadd.f32 %v4605_v43, %v5189_v26  ;;  %1164 = vadd.xlane.f32.xlu1 %v1163_v44  ;;  %v999_v48 = vpop.f32.mrb[21].mxu1  ;;  %v1166_v49 = vsel %vm1129_vm1, %v1109_v42, 0.0 }
 0x1f9   : > { %v4727_v50 = vpop.eup %4726  ;;  %v1000_v51 = vadd.f32 %v5189_v26, %v999_v48  ;;  %1167 = vadd.xlane.f32.xlu0 %v1166_v49  ;;  %v1112_v55 = vmul.f32 %v4725_v46, %v5200_v38 }
 0x1fa   : > { %4736 = vtanh.f32 %v1005_v47  ;;  %v1111_v52 = vmul.f32 %v4727_v50, %v5200_v38 }
 0x1fb   : > { %4738 = vtanh.f32 %v1000_v51  ;;  %v4608_v53 = vpop.f32.mrb[22].mxu1  ;;  %v1175_v2 = vsel %vm1129_vm1, %v1112_v55, 0.0 }
 0x1fc   : > { %v4729_v58 = vpop.eup %4728  ;;  %v1015_v59 = vadd.f32 %v4608_v53, %v5189_v26  ;;  %1170 = vadd.xlane.f32.xlu1 %v1169_v54  ;;  %v1009_v60 = vpop.f32.mrb[23].mxu1  ;;  %v1172_v61 = vsel %vm1129_vm1, %v1111_v52, 0.0 }
 0x1fd   : > { %v4731_v62 = vpop.eup %4730  ;;  %v1010_v63 = vadd.f32 %v5189_v26, %v1009_v60  ;;  %1173 = vadd.xlane.f32.xlu0 %v1172_v61  ;;  %v1114_v3 = vmul.f32 %v4729_v58, %v5200_v38 }
 0x1fe   : > { %4740 = vtanh.f32 %v1015_v59  ;;  %v1113_v0 = vmul.f32 %v4731_v62, %v5200_v38 }
 0x1ff   : > { %4742 = vtanh.f32 %v1010_v63  ;;  %v4611_v1 = vpop.f32.mrb[24].mxu1  ;;  %v1181_v12 = vsel %vm1129_vm1, %v1114_v3, 0.0 }
 0x200   : > { %v4733_v4 = vpop.eup %4732  ;;  %v1025_v5 = vadd.f32 %v4611_v1, %v5189_v26  ;;  %1176 = vadd.xlane.f32.xlu1 %v1175_v2  ;;  %v1019_v6 = vpop.f32.mrb[25].mxu1  ;;  %v1178_v7 = vsel %vm1129_vm1, %v1113_v0, 0.0  ;;  %v1292_v0 = vlaneseq  ;;  %v4825_v1 = vmov 1966171168  }
 0x201   : > { %v4735_v8 = vpop.eup %4734  ;;  %v1020_v9 = vadd.f32 %v5189_v26, %v1019_v6  ;;  %1179 = vadd.xlane.f32.xlu0 %v1178_v7  ;;  %v1116_v13 = vmul.f32 %v4733_v4, %v5200_v38  ;;  %v2321_v2 = vunpack.c.l.s4 %v4825_v1  ;;  %v5295_v4 = vstv %s1226_s23 }
 0x202   : > { %4744 = vtanh.f32 %v1025_v5  ;;  %v1115_v10 = vmul.f32 %v4735_v8, %v5200_v38  ;;  %v5293_v3 = vshrl.u32 %v1292_v0, 7 }
 0x203   : > { %4746 = vtanh.f32 %v1020_v9  ;;  %v4614_v11 = vpop.f32.mrb[26].mxu1  ;;  %v1187_v21 = vsel %vm1129_vm1, %v1116_v13, 0.0  ;;  %v2322_v5 = vunpack.c.0.s8 %v2321_v2 }
 0x204   : > { %v4737_v14 = vpop.eup %4736  ;;  %v1035_v15 = vadd.f32 %v4614_v11, %v5189_v26  ;;  %1182 = vadd.xlane.f32.xlu1 %v1181_v12  ;;  %v1029_v16 = vpop.f32.mrb[27].mxu1  ;;  %v1184_v17 = vsel %vm1129_vm1, %v1115_v10, 0.0  ;;  %v5298_v6 = vsub.s32 0, %v5293_v3  ;;  %v5304_v7 = vsub.s32 2, %v5293_v3 }
 0x205   : > { %v4739_v18 = vpop.eup %4738  ;;  %v1030_v19 = vadd.f32 %v5189_v26, %v1029_v16  ;;  %1185 = vadd.xlane.f32.xlu0 %v1184_v17  ;;  %v1118_v23 = vmul.f32 %v4737_v14, %v5200_v38  ;;  %v5307_v8 = vsub.s32 3, %v5293_v3  ;;  %v5310_v10 = vsub.s32 4, %v5293_v3 }
 0x206   : > { %4748 = vtanh.f32 %v1035_v15  ;;  %v1117_v20 = vmul.f32 %v4739_v18, %v5200_v38  ;;  %v5313_v11 = vsub.s32 5, %v5293_v3  ;;  %v5316_v12 = vsub.s32 6, %v5293_v3 }
 0x207   : > { %4750 = vtanh.f32 %v1030_v19  ;;  %v4617_v22 = vpop.f32.mrb[28].mxu1  ;;  %v1193_v31 = vsel %vm1129_vm1, %v1118_v23, 0.0  ;;  %v5319_v13 = vsub.s32 7, %v5293_v3  ;;  %v5323_v15 = vsub.s32 %v2322_v5, %v5293_v3 }
 0x208   : > { %v4741_v24 = vpop.eup %4740  ;;  %1188 = vadd.xlane.f32.xlu1 %v1187_v21  ;;  %v1190_v25 = vsel %vm1129_vm1, %v1117_v20, 0.0  ;;  %v1045_v27 = vadd.f32 %v4617_v22, %v5189_v26  ;;  %v1039_v56 = vpop.f32.mrb[29].mxu1 }
 0x209   : > { %v4743_v28 = vpop.eup %4742  ;;  %1191 = vadd.xlane.f32.xlu0 %v1190_v25  ;;  %v1040_v29 = vadd.f32 %v5189_v26, %v1039_v56  ;;  %v1120_v32 = vmul.f32 %v4741_v24, %v5200_v38 }
 0x20a   : > { %4752 = vtanh.f32 %v1045_v27  ;;  %v1119_v30 = vmul.f32 %v4743_v28, %v5200_v38 }
 0x20b   : > { %4754 = vtanh.f32 %v1040_v29  ;;  %v4620_v33 = vpop.f32.mrb[30].mxu1  ;;  %v1199_v42 = vsel %vm1129_vm1, %v1120_v32, 0.0 }
 0x20c   : > { %v4745_v34 = vpop.eup %4744  ;;  %1194 = vadd.xlane.f32.xlu1 %v1193_v31  ;;  %v1196_v35 = vsel %vm1129_vm1, %v1119_v30, 0.0  ;;  %v1055_v36 = vadd.f32 %v4620_v33, %v5189_v26  ;;  %v1049_v37 = vpop.f32.mrb[31].mxu1 }
 0x20d   : > { %v4747_v39 = vpop.eup %4746  ;;  %1197 = vadd.xlane.f32.xlu0 %v1196_v35  ;;  %v1050_v40 = vadd.f32 %v5189_v26, %v1049_v37  ;;  %v1122_v43 = vmul.f32 %v4745_v34, %v5200_v38 }
 0x20e   : > { %v1121_v41 = vmul.f32 %v4747_v39, %v5200_v38  ;;  %4756 = vtanh.f32 %v1055_v36 }
 0x20f   : > { %4758 = vtanh.f32 %v1050_v40  ;;  %v1205_v48 = vsel %vm1129_vm1, %v1122_v43, 0.0 }
 0x210   : > { %v4749_v44 = vpop.eup %4748  ;;  %1200 = vadd.xlane.f32.xlu1 %v1199_v42  ;;  %v1202_v45 = vsel %vm1129_vm1, %v1121_v41, 0.0 }
 0x211   : > { %v4751_v46 = vpop.eup %4750  ;;  %1203 = vadd.xlane.f32.xlu0 %v1202_v45  ;;  %v1124_v26 = vmul.f32 %v4749_v44, %v5200_v38 }
 0x212   : > { %v1123_v47 = vmul.f32 %v4751_v46, %v5200_v38 }
 0x213   : > { %v1211_v54 = vsel %vm1129_vm1, %v1124_v26, 0.0 }
 0x214   : > { %v4753_v49 = vpop.eup %4752  ;;  %1206 = vadd.xlane.f32.xlu1 %v1205_v48  ;;  %v1208_v50 = vsel %vm1129_vm1, %v1123_v47, 0.0 }
 0x215   : > { %v4755_v51 = vpop.eup %4754  ;;  %1209 = vadd.xlane.f32.xlu0 %v1208_v50  ;;  %v1126_v52 = vmul.f32 %v4753_v49, %v5200_v38 }
 0x216   : > { %v1125_v53 = vmul.f32 %v4755_v51, %v5200_v38 }
 0x217   : > { %v1217_v59 = vsel %vm1129_vm1, %v1126_v52, 0.0 }
 0x218   : > { %v4757_v55 = vpop.eup %4756  ;;  %1212 = vadd.xlane.f32.xlu1 %v1211_v54  ;;  %v1214_v57 = vsel %vm1129_vm1, %v1125_v53, 0.0 }
 0x219   : > { %v4759_v58 = vpop.eup %4758  ;;  %1215 = vadd.xlane.f32.xlu0 %v1214_v57  ;;  %v1128_v60 = vmul.f32 %v4757_v55, %v5200_v38 }
 0x21a   : > { %v1127_v61 = vmul.f32 %v4759_v58, %v5200_v38  ;;  %v5301_v38 = vsub.s32 1, %v5293_v3 }
 0x21b   : > { %v1223_v62 = vsel %vm1129_vm1, %v1128_v60, 0.0 }
 0x21c   : > { %1218 = vadd.xlane.f32.xlu1 %v1217_v59  ;;  %v1220_v63 = vsel %vm1129_vm1, %v1127_v61, 0.0  ;;  %vm4188_vm1 = vcmp.lt.s32.totalorder %v1292_v0, 256 }
 0x21d   : > { %1221 = vadd.xlane.f32.xlu0 %v1220_v63 }
 0x220   : > { %1224 = vadd.xlane.f32.xlu1 %v1223_v62 }
 0x26d   : > { %v1135_v9 = vpop.xlane.xlu0 %1134 }
 0x26e   : > { %v1229_v14 = vadd.f32 %v5295_v4, %v1135_v9 }
 0x270   : > { %v1327_v16 = vrot.slane %v1229_v14, %v5298_v6  ;;  %v1331_v17 = vrot.slane %v1229_v14, %v5301_v38  ;;  %v1335_v18 = vrot.slane %v1229_v14, %v5304_v7  ;;  %v1339_v19 = vrot.slane %v1229_v14, %v5307_v8 }
 0x271   : > { %v1141_v20 = vpop.xlane.xlu1 %1140  ;;  %v1132_v21 = vpop.xlane.xlu0 %1131  ;;  %v1343_v22 = vrot.slane %v1229_v14, %v5310_v10  ;;  %v1347_v23 = vrot.slane %v1229_v14, %v5313_v11  ;;  %v1351_v24 = vrot.slane %v1229_v14, %v5316_v12  ;;  %v1355_v25 = vrot.slane %v1229_v14, %v5319_v13 }
 0x272   : > { %v1231_v27 = vadd.f32 %v5295_v4, %v1141_v20  ;;  %v2365_v56 = vcombine.low %v1327_v16, %v1331_v17  ;;  %v2366_v28 = vcombine.low %v1335_v18, %v1339_v19  ;;  %v1228_v29 = vadd.f32 %v5295_v4, %v1132_v21 }
 0x273   : > { %v2367_v30 = vcombine.low %v1343_v22, %v1347_v23  ;;  %v2368_v31 = vcombine.low %v1351_v24, %v1355_v25 }
 0x274   : > { %v2375_v32 = vrot.slane %v2365_v56, %v5323_v15  ;;  %v2382_v33 = vrot.slane %v2366_v28, %v5323_v15  ;;  %v1391_v34 = vrot.slane %v1231_v27, %v5298_v6  ;;  %v1395_v35 = vrot.slane %v1231_v27, %v5301_v38 }
 0x275   : > { %v1138_v36 = vpop.xlane.xlu1 %1137  ;;  %v2389_v37 = vrot.slane %v2367_v30, %v5323_v15  ;;  %v2396_v39 = vrot.slane %v2368_v31, %v5323_v15  ;;  %v1399_v40 = vrot.slane %v1231_v27, %v5304_v7  ;;  %v1403_v41 = vrot.slane %v1231_v27, %v5307_v8 }
 0x276   : > { %v5344_v42 = vadd.f32 %v5295_v4, %v1138_v36  ;;  %v1144_v43 = vpop.xlane.xlu0 %1143  ;;  %v2397_v44 = vcombine.low %v2375_v32, %v2382_v33  ;;  %v1407_v45 = vrot.slane %v1231_v27, %v5310_v10  ;;  %v1411_v46 = vrot.slane %v1231_v27, %v5313_v11 }
 0x277   : > { %v5349_v47 = vadd.f32 %v5295_v4, %v1144_v43  ;;  %v2398_v48 = vcombine.low %v2389_v37, %v2396_v39  ;;  %v1415_v26 = vrot.slane %v1231_v27, %v5316_v12  ;;  %v1419_v49 = vrot.slane %v1231_v27, %v5319_v13 }
 0x278   : > { %v2405_v50 = vrot.slane %v2397_v44, %v5323_v15  ;;  %v2463_v51 = vcombine.low %v1391_v34, %v1395_v35  ;;  %v2464_v52 = vcombine.low %v1399_v40, %v1403_v41  ;;  %v2465_v53 = vcombine.low %v1407_v45, %v1411_v46 }
 0x279   : > { %v1147_v54 = vpop.xlane.xlu1 %1146  ;;  %v2412_v55 = vrot.slane %v2398_v48, %v5323_v15  ;;  %v2466_v57 = vcombine.low %v1415_v26, %v1419_v49  ;;  %v1295_v58 = vrot.slane %v1228_v29, %v5298_v6  ;;  %v1299_v59 = vrot.slane %v1228_v29, %v5301_v38 }
 0x27a   : > { %v5358_v60 = vadd.f32 %v5295_v4, %v1147_v54  ;;  %v1150_v61 = vpop.xlane.xlu0 %1149  ;;  %v2473_v62 = vrot.slane %v2463_v51, %v5323_v15  ;;  %v2480_v63 = vrot.slane %v2464_v52, %v5323_v15  ;;  %v2487_v1 = vrot.slane %v2465_v53, %v5323_v15 }
 0x27b   : > { %v5364_v2 = vadd.f32 %v5295_v4, %v1150_v61  ;;  %v2413_v5 = vcombine.low %v2405_v50, %v2412_v55  ;;  %v2494_v9 = vrot.slane %v2466_v57, %v5323_v15  ;;  %v1303_v14 = vrot.slane %v1228_v29, %v5304_v7 }
 0x27c   : > { %v2495_v16 = vcombine.low %v2473_v62, %v2480_v63  ;;  %v1307_v17 = vrot.slane %v1228_v29, %v5307_v8  ;;  %v1311_v18 = vrot.slane %v1228_v29, %v5310_v10  ;;  %v1315_v19 = vrot.slane %v1228_v29, %v5313_v11 }
 0x27d   : > { %3888 = vperm.xlu1 %4694, %v2413_v5   ;;  %v1153_v20 = vpop.xlane.xlu1 %1152  ;;  %v2496_v21 = vcombine.low %v2487_v1, %v2494_v9  ;;  %v1319_v22 = vrot.slane %v1228_v29, %v5316_v12  ;;  %v1323_v23 = vrot.slane %v1228_v29, %v5319_v13  ;;  %v2316_v24 = vcombine.low %v1295_v58, %v1299_v59 }
 0x27e   : > { %v5374_v25 = vadd.f32 %v5295_v4, %v1153_v20  ;;  %v1156_v27 = vpop.xlane.xlu0 %1155  ;;  %v2503_v56 = vrot.slane %v2495_v16, %v5323_v15  ;;  %v2317_v28 = vcombine.low %v1303_v14, %v1307_v17  ;;  %v2318_v30 = vcombine.low %v1311_v18, %v1315_v19 }
 0x27f   : > { %v5378_v31 = vadd.f32 %v5295_v4, %v1156_v27  ;;  %v2510_v32 = vrot.slane %v2496_v21, %v5323_v15  ;;  %v2319_v33 = vcombine.low %v1319_v22, %v1323_v23  ;;  %v2326_v34 = vrot.slane %v2316_v24, %v5323_v15 }
 0x280   : > { %v2333_v35 = vrot.slane %v2317_v28, %v5323_v15  ;;  %v2340_v29 = vrot.slane %v2318_v30, %v5323_v15  ;;  %v1359_v36 = vrot.slane %v5344_v42, %v5298_v6  ;;  %v1363_v37 = vrot.slane %v5344_v42, %v5301_v38 }
 0x281   : > { %v2511_v39 = vcombine.low %v2503_v56, %v2510_v32  ;;  %v2347_v40 = vrot.slane %v2319_v33, %v5323_v15  ;;  %v1159_v41 = vpop.xlane.xlu1 %1158  ;;  %v1367_v43 = vrot.slane %v5344_v42, %v5304_v7  ;;  %v1371_v44 = vrot.slane %v5344_v42, %v5307_v8 }
 0x282   : > { %v2348_v45 = vcombine.low %v2326_v34, %v2333_v35  ;;  %v5394_v46 = vadd.f32 %v5295_v4, %v1159_v41  ;;  %v1162_v48 = vpop.xlane.xlu0 %1161  ;;  %v1375_v26 = vrot.slane %v5344_v42, %v5310_v10  ;;  %v1379_v49 = vrot.slane %v5344_v42, %v5313_v11 }
 0x283   : > { %3894 = vperm.xlu1 %4694, %v2511_v39   ;;  %v2349_v50 = vcombine.low %v2340_v29, %v2347_v40  ;;  %v5401_v51 = vadd.f32 %v5295_v4, %v1162_v48  ;;  %v1383_v52 = vrot.slane %v5344_v42, %v5316_v12  ;;  %v1387_v53 = vrot.slane %v5344_v42, %v5319_v13 }
 0x284   : > { %v2356_v54 = vrot.slane %v2348_v45, %v5323_v15  ;;  %v2414_v55 = vcombine.low %v1359_v36, %v1363_v37  ;;  %v2415_v57 = vcombine.low %v1367_v43, %v1371_v44  ;;  %v2416_v58 = vcombine.low %v1375_v26, %v1379_v49 }
 0x285   : > { %v2363_v59 = vrot.slane %v2349_v50, %v5323_v15  ;;  %v2417_v61 = vcombine.low %v1383_v52, %v1387_v53  ;;  %v1165_v62 = vpop.xlane.xlu1 %1164  ;;  %v1455_v63 = vrot.slane %v5358_v60, %v5298_v6  ;;  %v1459_v1 = vrot.slane %v5358_v60, %v5301_v38 }
 0x286   : > { %v2424_v5 = vrot.slane %v2414_v55, %v5323_v15  ;;  %v2431_v9 = vrot.slane %v2415_v57, %v5323_v15  ;;  %v2438_v42 = vrot.slane %v2416_v58, %v5323_v15  ;;  %v5417_v14 = vadd.f32 %v5295_v4, %v1165_v62  ;;  %v1168_v16 = vpop.xlane.xlu0 %1167 }
 0x287   : > { %v2364_v17 = vcombine.low %v2356_v54, %v2363_v59  ;;  %v2445_v18 = vrot.slane %v2417_v61, %v5323_v15  ;;  %v5421_v19 = vadd.f32 %v5295_v4, %v1168_v16  ;;  %v1463_v20 = vrot.slane %v5358_v60, %v5304_v7 }
 0x288   : > { %v2446_v21 = vcombine.low %v2424_v5, %v2431_v9  ;;  %v1467_v22 = vrot.slane %v5358_v60, %v5307_v8  ;;  %v1471_v23 = vrot.slane %v5358_v60, %v5310_v10  ;;  %v1475_v24 = vrot.slane %v5358_v60, %v5313_v11 }
 0x289   : > { %3885 = vperm.xlu0 %4695, %v2364_v17   ;;  %v2447_v27 = vcombine.low %v2438_v42, %v2445_v18  ;;  %v1479_v56 = vrot.slane %v5358_v60, %v5316_v12  ;;  %v1483_v28 = vrot.slane %v5358_v60, %v5319_v13  ;;  %v2561_v30 = vcombine.low %v1455_v63, %v1459_v1  ;;  %v1171_v32 = vpop.xlane.xlu1 %1170 }
 0x28a   : > { %v2454_v33 = vrot.slane %v2446_v21, %v5323_v15  ;;  %v2562_v34 = vcombine.low %v1463_v20, %v1467_v22  ;;  %v2563_v35 = vcombine.low %v1471_v23, %v1475_v24  ;;  %v5437_v29 = vadd.f32 %v5295_v4, %v1171_v32  ;;  %v1174_v36 = vpop.xlane.xlu0 %1173 }
 0x28b   : > { %v2461_v37 = vrot.slane %v2447_v27, %v5323_v15  ;;  %v2564_v39 = vcombine.low %v1479_v56, %v1483_v28  ;;  %v2571_v40 = vrot.slane %v2561_v30, %v5323_v15  ;;  %v5442_v41 = vadd.f32 %v5295_v4, %v1174_v36 }
 0x28c   : > { %v2578_v60 = vrot.slane %v2562_v34, %v5323_v15  ;;  %v2585_v43 = vrot.slane %v2563_v35, %v5323_v15  ;;  %v1423_v44 = vrot.slane %v5349_v47, %v5298_v6  ;;  %v1427_v45 = vrot.slane %v5349_v47, %v5301_v38 }
 0x28d   : > { %v2462_v48 = vcombine.low %v2454_v33, %v2461_v37  ;;  %v2592_v26 = vrot.slane %v2564_v39, %v5323_v15  ;;  %v1431_v49 = vrot.slane %v5349_v47, %v5304_v7  ;;  %v1435_v50 = vrot.slane %v5349_v47, %v5307_v8  ;;  %v1177_v52 = vpop.xlane.xlu1 %1176 }
 0x28e   : > { %v2593_v53 = vcombine.low %v2571_v40, %v2578_v60  ;;  %v1439_v54 = vrot.slane %v5349_v47, %v5310_v10  ;;  %v1443_v55 = vrot.slane %v5349_v47, %v5313_v11  ;;  %v1447_v57 = vrot.slane %v5349_v47, %v5316_v12  ;;  %v1180_v58 = vpop.xlane.xlu0 %1179 }
 0x28f   : > { %3891 = vperm.xlu1 %4694, %v2462_v48   ;;  %v2594_v59 = vcombine.low %v2585_v43, %v2592_v26  ;;  %v1451_v61 = vrot.slane %v5349_v47, %v5319_v13  ;;  %v2512_v62 = vcombine.low %v1423_v44, %v1427_v45  ;;  %v2513_v63 = vcombine.low %v1431_v49, %v1435_v50 }
 0x290   : > { %v2601_v1 = vrot.slane %v2593_v53, %v5323_v15  ;;  %v2514_v5 = vcombine.low %v1439_v54, %v1443_v55  ;;  %v5465_v9 = vadd.f32 %v5295_v4, %v1177_v52  ;;  %v5468_v42 = vadd.f32 %v5295_v4, %v1180_v58 }
 0x291   : > { %v2608_v16 = vrot.slane %v2594_v59, %v5323_v15  ;;  %v2515_v17 = vcombine.low %v1447_v57, %v1451_v61  ;;  %v2522_v18 = vrot.slane %v2512_v62, %v5323_v15  ;;  %v2529_v20 = vrot.slane %v2513_v63, %v5323_v15  ;;  %v1183_v49 = vpop.xlane.xlu1 %1182 }
 0x292   : > { %v2536_v47 = vrot.slane %v2514_v5, %v5323_v15  ;;  %v1583_v21 = vrot.slane %v5394_v46, %v5298_v6  ;;  %v1587_v22 = vrot.slane %v5394_v46, %v5301_v38  ;;  %v1591_v23 = vrot.slane %v5394_v46, %v5304_v7  ;;  %v1186_v55 = vpop.xlane.xlu0 %1185 }
 0x293   : > { %v2609_v24 = vcombine.low %v2601_v1, %v2608_v16  ;;  %v2543_v27 = vrot.slane %v2515_v17, %v5323_v15  ;;  %v2544_v56 = vcombine.low %v2522_v18, %v2529_v20  ;;  %v1595_v28 = vrot.slane %v5394_v46, %v5307_v8 }
 0x294   : > { %v1599_v30 = vrot.slane %v5394_v46, %v5310_v10  ;;  %v1603_v32 = vrot.slane %v5394_v46, %v5313_v11  ;;  %v1607_v33 = vrot.slane %v5394_v46, %v5316_v12  ;;  %v1611_v34 = vrot.slane %v5394_v46, %v5319_v13 }
 0x295   : > { %3900 = vperm.xlu1 %4694, %v2609_v24   ;;  %v2545_v35 = vcombine.low %v2536_v47, %v2543_v27  ;;  %v2552_v36 = vrot.slane %v2544_v56, %v5323_v15  ;;  %v2757_v37 = vcombine.low %v1583_v21, %v1587_v22  ;;  %v2758_v39 = vcombine.low %v1591_v23, %v1595_v28  ;;  %v1189_v28 = vpop.xlane.xlu1 %1188 }
 0x296   : > { %v2759_v40 = vcombine.low %v1599_v30, %v1603_v32  ;;  %v2760_v60 = vcombine.low %v1607_v33, %v1611_v34  ;;  %v1519_v43 = vrot.slane %v5374_v25, %v5298_v6  ;;  %v1523_v44 = vrot.slane %v5374_v25, %v5301_v38 }
 0x297   : > { %v2559_v45 = vrot.slane %v2545_v35, %v5323_v15  ;;  %v2767_v48 = vrot.slane %v2757_v37, %v5323_v15  ;;  %v2774_v46 = vrot.slane %v2758_v39, %v5323_v15  ;;  %v1527_v26 = vrot.slane %v5374_v25, %v5304_v7  ;;  %v1192_v35 = vpop.xlane.xlu0 %1191 }
 0x298   : > { %v2781_v50 = vrot.slane %v2759_v40, %v5323_v15  ;;  %v2788_v52 = vrot.slane %v2760_v60, %v5323_v15  ;;  %v1531_v53 = vrot.slane %v5374_v25, %v5307_v8  ;;  %v1535_v54 = vrot.slane %v5374_v25, %v5310_v10 }
 0x299   : > { %v2560_v57 = vcombine.low %v2552_v36, %v2559_v45  ;;  %v2789_v58 = vcombine.low %v2767_v48, %v2774_v46  ;;  %v1539_v59 = vrot.slane %v5374_v25, %v5313_v11  ;;  %v1543_v61 = vrot.slane %v5374_v25, %v5316_v12 }
 0x29a   : > { %v2790_v62 = vcombine.low %v2781_v50, %v2788_v52  ;;  %v1547_v63 = vrot.slane %v5374_v25, %v5319_v13  ;;  %v2659_v1 = vcombine.low %v1519_v43, %v1523_v44  ;;  %v2660_v5 = vcombine.low %v1527_v26, %v1531_v53 }
 0x29b   : > { %3897 = vperm.xlu1 %4694, %v2560_v57   ;;  %v2797_v16 = vrot.slane %v2789_v58, %v5323_v15  ;;  %v2661_v17 = vcombine.low %v1535_v54, %v1539_v59  ;;  %v5515_v18 = vadd.f32 %v5295_v4, %v1183_v49  ;;  %v5518_v20 = vadd.f32 %v5295_v4, %v1186_v55  ;;  %v1195_v59 = vpop.xlane.xlu1 %1194 }
 0x29c   : > { %v2804_v47 = vrot.slane %v2790_v62, %v5323_v15  ;;  %v2662_v21 = vcombine.low %v1543_v61, %v1547_v63  ;;  %v2669_v22 = vrot.slane %v2659_v1, %v5323_v15  ;;  %v2676_v23 = vrot.slane %v2660_v5, %v5323_v15  ;;  %v1198_v5 = vpop.xlane.xlu0 %1197 }
 0x29d   : > { %v2683_v25 = vrot.slane %v2661_v17, %v5323_v15  ;;  %v1487_v24 = vrot.slane %v5364_v2, %v5298_v6  ;;  %v1491_v27 = vrot.slane %v5364_v2, %v5301_v38  ;;  %v1495_v56 = vrot.slane %v5364_v2, %v5304_v7 }
 0x29e   : > { %v2805_v30 = vcombine.low %v2797_v16, %v2804_v47  ;;  %v2690_v32 = vrot.slane %v2662_v21, %v5323_v15  ;;  %v2691_v33 = vcombine.low %v2669_v22, %v2676_v23  ;;  %v1499_v34 = vrot.slane %v5364_v2, %v5307_v8 }
 0x29f   : > { %v1503_v36 = vrot.slane %v5364_v2, %v5310_v10  ;;  %v1507_v37 = vrot.slane %v5364_v2, %v5313_v11  ;;  %v1511_v39 = vrot.slane %v5364_v2, %v5316_v12  ;;  %v1515_v40 = vrot.slane %v5364_v2, %v5319_v13 }
 0x2a0   : > { %3912 = vperm.xlu0 %4695, %v2805_v30   ;;  %v2692_v60 = vcombine.low %v2683_v25, %v2690_v32  ;;  %v2699_v43 = vrot.slane %v2691_v33, %v5323_v15  ;;  %v2610_v44 = vcombine.low %v1487_v24, %v1491_v27  ;;  %v2611_v45 = vcombine.low %v1495_v56, %v1499_v34 }
 0x2a1   : > { %v2612_v48 = vcombine.low %v1503_v36, %v1507_v37  ;;  %v2613_v46 = vcombine.low %v1511_v39, %v1515_v40  ;;  %v5543_v26 = vadd.f32 %v5295_v4, %v1189_v28  ;;  %v5546_v49 = vadd.f32 %v5295_v4, %v1192_v35  ;;  %v1201_v40 = vpop.xlane.xlu1 %1200 }
 0x2a2   : > { %v2706_v50 = vrot.slane %v2692_v60, %v5323_v15  ;;  %v2620_v52 = vrot.slane %v2610_v44, %v5323_v15  ;;  %v2627_v2 = vrot.slane %v2611_v45, %v5323_v15  ;;  %v1551_v53 = vrot.slane %v5378_v31, %v5298_v6 }
 0x2a3   : > { %v2634_v54 = vrot.slane %v2612_v48, %v5323_v15  ;;  %v2641_v55 = vrot.slane %v2613_v46, %v5323_v15  ;;  %v1555_v57 = vrot.slane %v5378_v31, %v5301_v38  ;;  %v1559_v58 = vrot.slane %v5378_v31, %v5304_v7  ;;  %v1204_v48 = vpop.xlane.xlu0 %1203 }
 0x2a4   : > { %v2707_v61 = vcombine.low %v2699_v43, %v2706_v50  ;;  %v2642_v62 = vcombine.low %v2620_v52, %v2627_v2  ;;  %v1563_v63 = vrot.slane %v5378_v31, %v5307_v8  ;;  %v1567_v1 = vrot.slane %v5378_v31, %v5310_v10 }
 0x2a5   : > { %v2643_v16 = vcombine.low %v2634_v54, %v2641_v55  ;;  %v1571_v17 = vrot.slane %v5378_v31, %v5313_v11  ;;  %v1575_v47 = vrot.slane %v5378_v31, %v5316_v12  ;;  %v1579_v21 = vrot.slane %v5378_v31, %v5319_v13 }
 0x2a6   : > { %3906 = vperm.xlu1 %4694, %v2707_v61   ;;  %v2650_v22 = vrot.slane %v2642_v62, %v5323_v15  ;;  %v2708_v23 = vcombine.low %v1551_v53, %v1555_v57  ;;  %v2709_v25 = vcombine.low %v1559_v58, %v1563_v63  ;;  %v5571_v24 = vadd.f32 %v5295_v4, %v1195_v59 }
 0x2a7   : > { %v2657_v27 = vrot.slane %v2643_v16, %v5323_v15  ;;  %v2710_v56 = vcombine.low %v1567_v1, %v1571_v17  ;;  %v2711_v28 = vcombine.low %v1575_v47, %v1579_v21  ;;  %v5575_v30 = vadd.f32 %v5295_v4, %v1198_v5 }
 0x2a8   : > { %v2718_v32 = vrot.slane %v2708_v23, %v5323_v15  ;;  %v2725_v33 = vrot.slane %v2709_v25, %v5323_v15  ;;  %v1647_v31 = vrot.slane %v5417_v14, %v5298_v6  ;;  %v1651_v34 = vrot.slane %v5417_v14, %v5301_v38 }
 0x2a9   : > { %v2658_v35 = vcombine.low %v2650_v22, %v2657_v27  ;;  %v2732_v36 = vrot.slane %v2710_v56, %v5323_v15  ;;  %v2739_v37 = vrot.slane %v2711_v28, %v5323_v15  ;;  %v1655_v39 = vrot.slane %v5417_v14, %v5304_v7 }
 0x2aa   : > { %v2740_v60 = vcombine.low %v2718_v32, %v2725_v33  ;;  %v1659_v43 = vrot.slane %v5417_v14, %v5307_v8  ;;  %v1663_v44 = vrot.slane %v5417_v14, %v5310_v10  ;;  %v1667_v45 = vrot.slane %v5417_v14, %v5313_v11 }
 0x2ab   : > { %3903 = vperm.xlu1 %4694, %v2658_v35   ;;  %v2741_v46 = vcombine.low %v2732_v36, %v2739_v37  ;;  %v1671_v50 = vrot.slane %v5417_v14, %v5316_v12  ;;  %v1675_v52 = vrot.slane %v5417_v14, %v5319_v13  ;;  %v2855_v2 = vcombine.low %v1647_v31, %v1651_v34 }
 0x2ac   : > { %v2748_v53 = vrot.slane %v2740_v60, %v5323_v15  ;;  %v2856_v54 = vcombine.low %v1655_v39, %v1659_v43  ;;  %v2857_v55 = vcombine.low %v1663_v44, %v1667_v45  ;;  %v5599_v57 = vadd.f32 %v5295_v4, %v1201_v40 }
 0x2ad   : > { %v2755_v58 = vrot.slane %v2741_v46, %v5323_v15  ;;  %v2858_v59 = vcombine.low %v1671_v50, %v1675_v52  ;;  %v2865_v61 = vrot.slane %v2855_v2, %v5323_v15  ;;  %v5604_v62 = vadd.f32 %v5295_v4, %v1204_v48  ;;  %v1207_v48 = vpop.xlane.xlu1 %1206 }
 0x2ae   : > { %v2872_v63 = vrot.slane %v2856_v54, %v5323_v15  ;;  %v2879_v14 = vrot.slane %v2857_v55, %v5323_v15  ;;  %v1839_v1 = vrot.slane %v5515_v18, %v5298_v6  ;;  %v1843_v5 = vrot.slane %v5515_v18, %v5301_v38 }
 0x2af   : > { %v2756_v16 = vcombine.low %v2748_v53, %v2755_v58  ;;  %v2886_v17 = vrot.slane %v2858_v59, %v5323_v15  ;;  %v1847_v47 = vrot.slane %v5515_v18, %v5304_v7  ;;  %v1851_v21 = vrot.slane %v5515_v18, %v5307_v8  ;;  %v1210_v53 = vpop.xlane.xlu0 %1209 }
 0x2b0   : > { %v2887_v22 = vcombine.low %v2865_v61, %v2872_v63  ;;  %v1855_v23 = vrot.slane %v5515_v18, %v5310_v10  ;;  %v1859_v25 = vrot.slane %v5515_v18, %v5313_v11  ;;  %v1863_v27 = vrot.slane %v5515_v18, %v5316_v12 }
 0x2b1   : > { %3909 = vperm.xlu1 %4694, %v2756_v16   ;;  %v2888_v56 = vcombine.low %v2879_v14, %v2886_v17  ;;  %v1867_v28 = vrot.slane %v5515_v18, %v5319_v13  ;;  %v3149_v32 = vcombine.low %v1839_v1, %v1843_v5  ;;  %v3150_v33 = vcombine.low %v1847_v47, %v1851_v21 }
 0x2b2   : > { %v2895_v31 = vrot.slane %v2887_v22, %v5323_v15  ;;  %v3151_v34 = vcombine.low %v1855_v23, %v1859_v25  ;;  %v1615_v35 = vrot.slane %v5401_v51, %v5298_v6  ;;  %v1619_v36 = vrot.slane %v5401_v51, %v5301_v38 }
 0x2b3   : > { %v2902_v37 = vrot.slane %v2888_v56, %v5323_v15  ;;  %v3152_v39 = vcombine.low %v1863_v27, %v1867_v28  ;;  %v3159_v40 = vrot.slane %v3149_v32, %v5323_v15  ;;  %v3166_v60 = vrot.slane %v3150_v33, %v5323_v15 }
 0x2b4   : > { %v3173_v18 = vrot.slane %v3151_v34, %v5323_v15  ;;  %v1623_v43 = vrot.slane %v5401_v51, %v5304_v7  ;;  %v1627_v44 = vrot.slane %v5401_v51, %v5307_v8  ;;  %v1631_v45 = vrot.slane %v5401_v51, %v5310_v10 }
 0x2b5   : > { %v2903_v46 = vcombine.low %v2895_v31, %v2902_v37  ;;  %v3180_v50 = vrot.slane %v3152_v39, %v5323_v15  ;;  %v3181_v52 = vcombine.low %v3159_v40, %v3166_v60  ;;  %v1635_v2 = vrot.slane %v5401_v51, %v5313_v11 }
 0x2b6   : > { %v1639_v54 = vrot.slane %v5401_v51, %v5316_v12  ;;  %v1643_v55 = vrot.slane %v5401_v51, %v5319_v13  ;;  %v2806_v58 = vcombine.low %v1615_v35, %v1619_v36  ;;  %v2807_v59 = vcombine.low %v1623_v43, %v1627_v44 }
 0x2b7   : > { %3918 = vperm.xlu1 %4694, %v2903_v46   ;;  %v3182_v61 = vcombine.low %v3173_v18, %v3180_v50  ;;  %v3189_v63 = vrot.slane %v3181_v52, %v5323_v15  ;;  %v2808_v14 = vcombine.low %v1631_v45, %v1635_v2  ;;  %v5649_v1 = vadd.f32 %v5295_v4, %v1207_v48 }
 0x2b8   : > { %v2809_v5 = vcombine.low %v1639_v54, %v1643_v55  ;;  %v2816_v16 = vrot.slane %v2806_v58, %v5323_v15  ;;  %v2823_v17 = vrot.slane %v2807_v59, %v5323_v15  ;;  %v5654_v47 = vadd.f32 %v5295_v4, %v1210_v53  ;;  %v1213_v53 = vpop.xlane.xlu1 %1212 }
 0x2b9   : > { %v3196_v51 = vrot.slane %v3182_v61, %v5323_v15  ;;  %v2830_v21 = vrot.slane %v2808_v14, %v5323_v15  ;;  %v1903_v22 = vrot.slane %v5543_v26, %v5298_v6  ;;  %v1907_v23 = vrot.slane %v5543_v26, %v5301_v38 }
 0x2ba   : > { %v2837_v25 = vrot.slane %v2809_v5, %v5323_v15  ;;  %v2838_v27 = vcombine.low %v2816_v16, %v2823_v17  ;;  %v1911_v56 = vrot.slane %v5543_v26, %v5304_v7  ;;  %v1915_v28 = vrot.slane %v5543_v26, %v5307_v8 }
 0x2bb   : > { %v3197_v32 = vcombine.low %v3189_v63, %v3196_v51  ;;  %v1919_v33 = vrot.slane %v5543_v26, %v5310_v10  ;;  %v1923_v31 = vrot.slane %v5543_v26, %v5313_v11  ;;  %v1927_v34 = vrot.slane %v5543_v26, %v5316_v12 }
 0x2bc   : > { %v2839_v35 = vcombine.low %v2830_v21, %v2837_v25  ;;  %v2846_v36 = vrot.slane %v2838_v27, %v5323_v15  ;;  %v1931_v37 = vrot.slane %v5543_v26, %v5319_v13  ;;  %v3247_v39 = vcombine.low %v1903_v22, %v1907_v23 }
 0x2bd   : > { %3936 = vperm.xlu0 %4695, %v3197_v32   ;;  %v3248_v40 = vcombine.low %v1911_v56, %v1915_v28  ;;  %v3249_v60 = vcombine.low %v1919_v33, %v1923_v31  ;;  %v1711_v18 = vrot.slane %v5437_v29, %v5298_v6  ;;  %v1715_v43 = vrot.slane %v5437_v29, %v5301_v38 }
 0x2be   : > { %v2853_v44 = vrot.slane %v2839_v35, %v5323_v15  ;;  %v3250_v45 = vcombine.low %v1927_v34, %v1931_v37  ;;  %v3257_v48 = vrot.slane %v3247_v39, %v5323_v15  ;;  %v1719_v46 = vrot.slane %v5437_v29, %v5304_v7 }
 0x2bf   : > { %v3264_v26 = vrot.slane %v3248_v40, %v5323_v15  ;;  %v3271_v50 = vrot.slane %v3249_v60, %v5323_v15  ;;  %v1723_v52 = vrot.slane %v5437_v29, %v5307_v8  ;;  %v1727_v2 = vrot.slane %v5437_v29, %v5310_v10 }
 0x2c0   : > { %v2854_v54 = vcombine.low %v2846_v36, %v2853_v44  ;;  %v3278_v55 = vrot.slane %v3250_v45, %v5323_v15  ;;  %v1731_v58 = vrot.slane %v5437_v29, %v5313_v11  ;;  %v1735_v59 = vrot.slane %v5437_v29, %v5316_v12 }
 0x2c1   : > { %v3279_v61 = vcombine.low %v3257_v48, %v3264_v26  ;;  %v1739_v63 = vrot.slane %v5437_v29, %v5319_v13  ;;  %v2953_v14 = vcombine.low %v1711_v18, %v1715_v43  ;;  %v2954_v5 = vcombine.low %v1719_v46, %v1723_v52 }
 0x2c2   : > { %3915 = vperm.xlu1 %4694, %v2854_v54   ;;  %v3280_v16 = vcombine.low %v3271_v50, %v3278_v55  ;;  %v2955_v17 = vcombine.low %v1727_v2, %v1731_v58  ;;  %v5698_v51 = vadd.f32 %v5295_v4, %v1213_v53  ;;  %v1967_v21 = vrot.slane %v5571_v24, %v5298_v6 }
 0x2c3   : > { %v3287_v22 = vrot.slane %v3279_v61, %v5323_v15  ;;  %v2956_v23 = vcombine.low %v1735_v59, %v1739_v63  ;;  %v2963_v25 = vrot.slane %v2953_v14, %v5323_v15  ;;  %v2970_v27 = vrot.slane %v2954_v5, %v5323_v15  ;;  %v1219_v59 = vpop.xlane.xlu1 %1218  ;;  %v1216_v61 = vpop.xlane.xlu0 %1215 }
 0x2c4   : > { %v3294_v29 = vrot.slane %v3280_v16, %v5323_v15  ;;  %v2977_v56 = vrot.slane %v2955_v17, %v5323_v15  ;;  %v1971_v28 = vrot.slane %v5571_v24, %v5301_v38  ;;  %v1975_v32 = vrot.slane %v5571_v24, %v5304_v7 }
 0x2c5   : > { %v2984_v33 = vrot.slane %v2956_v23, %v5323_v15  ;;  %v2985_v31 = vcombine.low %v2963_v25, %v2970_v27  ;;  %v1979_v34 = vrot.slane %v5571_v24, %v5307_v8  ;;  %v1983_v35 = vrot.slane %v5571_v24, %v5310_v10 }
 0x2c6   : > { %v3295_v36 = vcombine.low %v3287_v22, %v3294_v29  ;;  %v1987_v37 = vrot.slane %v5571_v24, %v5313_v11  ;;  %v1991_v39 = vrot.slane %v5571_v24, %v5316_v12  ;;  %v1995_v40 = vrot.slane %v5571_v24, %v5319_v13 }
 0x2c7   : > { %v2986_v60 = vcombine.low %v2977_v56, %v2984_v33  ;;  %v2993_v18 = vrot.slane %v2985_v31, %v5323_v15  ;;  %v3345_v43 = vcombine.low %v1967_v21, %v1971_v28  ;;  %v3346_v44 = vcombine.low %v1975_v32, %v1979_v34 }
 0x2c8   : > { %3942 = vperm.xlu0 %4695, %v3295_v36   ;;  %v3347_v45 = vcombine.low %v1983_v35, %v1987_v37  ;;  %v3348_v48 = vcombine.low %v1991_v39, %v1995_v40  ;;  %v1679_v46 = vrot.slane %v5421_v19, %v5298_v6  ;;  %v1683_v26 = vrot.slane %v5421_v19, %v5301_v38 }
 0x2c9   : > { %v3000_v50 = vrot.slane %v2986_v60, %v5323_v15  ;;  %v3355_v52 = vrot.slane %v3345_v43, %v5323_v15  ;;  %v3362_v24 = vrot.slane %v3346_v44, %v5323_v15  ;;  %v1687_v2 = vrot.slane %v5421_v19, %v5304_v7 }
 0x2ca   : > { %v3369_v53 = vrot.slane %v3347_v45, %v5323_v15  ;;  %v3376_v54 = vrot.slane %v3348_v48, %v5323_v15  ;;  %v1691_v55 = vrot.slane %v5421_v19, %v5307_v8  ;;  %v1695_v58 = vrot.slane %v5421_v19, %v5310_v10 }
 0x2cb   : > { %v3001_v63 = vcombine.low %v2993_v18, %v3000_v50  ;;  %v3377_v14 = vcombine.low %v3355_v52, %v3362_v24  ;;  %v1699_v5 = vrot.slane %v5421_v19, %v5313_v11  ;;  %v1703_v16 = vrot.slane %v5421_v19, %v5316_v12 }
 0x2cc   : > { %v3378_v17 = vcombine.low %v3369_v53, %v3376_v54  ;;  %v1707_v21 = vrot.slane %v5421_v19, %v5319_v13  ;;  %v2904_v22 = vcombine.low %v1679_v46, %v1683_v26  ;;  %v2905_v23 = vcombine.low %v1687_v2, %v1691_v55 }
 0x2cd   : > { %3924 = vperm.xlu1 %4694, %v3001_v63   ;;  %v3385_v25 = vrot.slane %v3377_v14, %v5323_v15  ;;  %v2906_v27 = vcombine.low %v1695_v58, %v1699_v5  ;;  %v5746_v29 = vadd.f32 %v5295_v4, %v1219_v59  ;;  %v5749_v56 = vadd.f32 %v5295_v4, %v1216_v61 }
 0x2ce   : > { %v3392_v28 = vrot.slane %v3378_v17, %v5323_v15  ;;  %v2907_v32 = vcombine.low %v1703_v16, %v1707_v21  ;;  %v2914_v33 = vrot.slane %v2904_v22, %v5323_v15  ;;  %v2921_v31 = vrot.slane %v2905_v23, %v5323_v15 }
 0x2cf   : > { %v2928_v19 = vrot.slane %v2906_v27, %v5323_v15  ;;  %v2031_v34 = vrot.slane %v5599_v57, %v5298_v6  ;;  %v2035_v35 = vrot.slane %v5599_v57, %v5301_v38  ;;  %v2039_v36 = vrot.slane %v5599_v57, %v5304_v7 }
 0x2d0   : > { %v3393_v37 = vcombine.low %v3385_v25, %v3392_v28  ;;  %v2935_v39 = vrot.slane %v2907_v32, %v5323_v15  ;;  %v2936_v40 = vcombine.low %v2914_v33, %v2921_v31  ;;  %v2043_v60 = vrot.slane %v5599_v57, %v5307_v8 }
 0x2d1   : > { %v2047_v18 = vrot.slane %v5599_v57, %v5310_v10  ;;  %v2051_v43 = vrot.slane %v5599_v57, %v5313_v11  ;;  %v2055_v44 = vrot.slane %v5599_v57, %v5316_v12  ;;  %v2059_v45 = vrot.slane %v5599_v57, %v5319_v13 }
 0x2d2   : > { %3948 = vperm.xlu0 %4695, %v3393_v37   ;;  %v2937_v48 = vcombine.low %v2928_v19, %v2935_v39  ;;  %v2944_v46 = vrot.slane %v2936_v40, %v5323_v15  ;;  %v3443_v26 = vcombine.low %v2031_v34, %v2035_v35  ;;  %v3444_v50 = vcombine.low %v2039_v36, %v2043_v60 }
 0x2d3   : > { %v3445_v52 = vcombine.low %v2047_v18, %v2051_v43  ;;  %v3446_v24 = vcombine.low %v2055_v44, %v2059_v45  ;;  %v1807_v2 = vrot.slane %v5468_v42, %v5298_v6  ;;  %v1811_v53 = vrot.slane %v5468_v42, %v5301_v38 }
 0x2d4   : > { %v2951_v54 = vrot.slane %v2937_v48, %v5323_v15  ;;  %v3453_v55 = vrot.slane %v3443_v26, %v5323_v15  ;;  %v3460_v57 = vrot.slane %v3444_v50, %v5323_v15  ;;  %v1815_v58 = vrot.slane %v5468_v42, %v5304_v7 }
 0x2d5   : > { %v3467_v59 = vrot.slane %v3445_v52, %v5323_v15  ;;  %v3474_v61 = vrot.slane %v3446_v24, %v5323_v15  ;;  %v1819_v63 = vrot.slane %v5468_v42, %v5307_v8  ;;  %v1823_v14 = vrot.slane %v5468_v42, %v5310_v10 }
 0x2d6   : > { %v2952_v5 = vcombine.low %v2944_v46, %v2951_v54  ;;  %v3475_v16 = vcombine.low %v3453_v55, %v3460_v57  ;;  %v1827_v17 = vrot.slane %v5468_v42, %v5313_v11  ;;  %v1831_v21 = vrot.slane %v5468_v42, %v5316_v12 }
 0x2d7   : > { %v3476_v22 = vcombine.low %v3467_v59, %v3474_v61  ;;  %v1835_v23 = vrot.slane %v5468_v42, %v5319_v13  ;;  %v3100_v25 = vcombine.low %v1807_v2, %v1811_v53  ;;  %v3101_v27 = vcombine.low %v1815_v58, %v1819_v63 }
 0x2d8   : > { %3921 = vperm.xlu1 %4694, %v2952_v5   ;;  %v3483_v28 = vrot.slane %v3475_v16, %v5323_v15  ;;  %v3102_v32 = vcombine.low %v1823_v14, %v1827_v17  ;;  %v2095_v33 = vrot.slane %v5649_v1, %v5298_v6  ;;  %v2099_v31 = vrot.slane %v5649_v1, %v5301_v38  ;;  %v1225_v17 = vpop.xlane.xlu1 %1224 }
 0x2d9   : > { %v3490_v19 = vrot.slane %v3476_v22, %v5323_v15  ;;  %v3103_v34 = vcombine.low %v1831_v21, %v1835_v23  ;;  %v3110_v35 = vrot.slane %v3100_v25, %v5323_v15  ;;  %v3117_v36 = vrot.slane %v3101_v27, %v5323_v15  ;;  %v1222_v21 = vpop.xlane.xlu0 %1221 }
 0x2da   : > { %v3124_v42 = vrot.slane %v3102_v32, %v5323_v15  ;;  %v2103_v37 = vrot.slane %v5649_v1, %v5304_v7  ;;  %v2107_v39 = vrot.slane %v5649_v1, %v5307_v8  ;;  %v2111_v40 = vrot.slane %v5649_v1, %v5310_v10 }
 0x2db   : > { %v3491_v60 = vcombine.low %v3483_v28, %v3490_v19  ;;  %v3131_v18 = vrot.slane %v3103_v34, %v5323_v15  ;;  %v3132_v43 = vcombine.low %v3110_v35, %v3117_v36  ;;  %v2115_v44 = vrot.slane %v5649_v1, %v5313_v11 }
 0x2dc   : > { %v2119_v45 = vrot.slane %v5649_v1, %v5316_v12  ;;  %v2123_v48 = vrot.slane %v5649_v1, %v5319_v13  ;;  %v3541_v46 = vcombine.low %v2095_v33, %v2099_v31  ;;  %v3542_v26 = vcombine.low %v2103_v37, %v2107_v39 }
 0x2dd   : > { %3954 = vperm.xlu0 %4695, %v3491_v60   ;;  %v3133_v50 = vcombine.low %v3124_v42, %v3131_v18  ;;  %v3140_v52 = vrot.slane %v3132_v43, %v5323_v15  ;;  %v3543_v24 = vcombine.low %v2111_v40, %v2115_v44  ;;  %v1871_v2 = vrot.slane %v5518_v20, %v5298_v6 }
 0x2de   : > { %v3544_v53 = vcombine.low %v2119_v45, %v2123_v48  ;;  %v3551_v54 = vrot.slane %v3541_v46, %v5323_v15  ;;  %v3558_v55 = vrot.slane %v3542_v26, %v5323_v15  ;;  %v1875_v57 = vrot.slane %v5518_v20, %v5301_v38 }
 0x2df   : > { %v3147_v1 = vrot.slane %v3133_v50, %v5323_v15  ;;  %v3565_v58 = vrot.slane %v3543_v24, %v5323_v15  ;;  %v1879_v59 = vrot.slane %v5518_v20, %v5304_v7  ;;  %v1883_v61 = vrot.slane %v5518_v20, %v5307_v8 }
 0x2e0   : > { %v3572_v63 = vrot.slane %v3544_v53, %v5323_v15  ;;  %v3573_v14 = vcombine.low %v3551_v54, %v3558_v55  ;;  %v1887_v5 = vrot.slane %v5518_v20, %v5310_v10  ;;  %v1891_v16 = vrot.slane %v5518_v20, %v5313_v11 }
 0x2e1   : > { %v3148_v22 = vcombine.low %v3140_v52, %v3147_v1  ;;  %v1895_v23 = vrot.slane %v5518_v20, %v5316_v12  ;;  %v1899_v25 = vrot.slane %v5518_v20, %v5319_v13  ;;  %v3198_v27 = vcombine.low %v1871_v2, %v1875_v57 }
 0x2e2   : > { %v3574_v28 = vcombine.low %v3565_v58, %v3572_v63  ;;  %v3581_v32 = vrot.slane %v3573_v14, %v5323_v15  ;;  %v3199_v33 = vcombine.low %v1879_v59, %v1883_v61  ;;  %v3200_v31 = vcombine.low %v1887_v5, %v1891_v16 }
 0x2e3   : > { %3933 = vperm.xlu1 %4694, %v3148_v22   ;;  %v3201_v19 = vcombine.low %v1895_v23, %v1899_v25  ;;  %v3208_v34 = vrot.slane %v3198_v27, %v5323_v15  ;;  %v5841_v35 = vadd.f32 %v5295_v4, %v1225_v17  ;;  %v5844_v36 = vadd.f32 %v5295_v4, %v1222_v21 }
 0x2e4   : > { %v3588_v42 = vrot.slane %v3574_v28, %v5323_v15  ;;  %v3215_v20 = vrot.slane %v3199_v33, %v5323_v15  ;;  %v3222_v37 = vrot.slane %v3200_v31, %v5323_v15  ;;  %v2159_v39 = vrot.slane %v5698_v51, %v5298_v6 }
 0x2e5   : > { %v3229_v40 = vrot.slane %v3201_v19, %v5323_v15  ;;  %v2163_v60 = vrot.slane %v5698_v51, %v5301_v38  ;;  %v2167_v18 = vrot.slane %v5698_v51, %v5304_v7  ;;  %v2171_v4 = vrot.slane %v5698_v51, %v5307_v8 }
 0x2e6   : > { %v3589_v43 = vcombine.low %v3581_v32, %v3588_v42  ;;  %v3230_v44 = vcombine.low %v3208_v34, %v3215_v20  ;;  %v2175_v45 = vrot.slane %v5698_v51, %v5310_v10  ;;  %v2179_v48 = vrot.slane %v5698_v51, %v5313_v11 }
 0x2e7   : > { %v3231_v46 = vcombine.low %v3222_v37, %v3229_v40  ;;  %v2183_v26 = vrot.slane %v5698_v51, %v5316_v12  ;;  %v2187_v50 = vrot.slane %v5698_v51, %v5319_v13  ;;  %v3639_v52 = vcombine.low %v2159_v39, %v2163_v60 }
 0x2e8   : > { %3960 = vperm.xlu0 %4695, %v3589_v43   ;;  %v3238_v24 = vrot.slane %v3230_v44, %v5323_v15  ;;  %v3640_v2 = vcombine.low %v2167_v18, %v2171_v4  ;;  %v3641_v53 = vcombine.low %v2175_v45, %v2179_v48  ;;  %v1935_v54 = vrot.slane %v5546_v49, %v5298_v6 }
 0x2e9   : > { %v3245_v55 = vrot.slane %v3231_v46, %v5323_v15  ;;  %v3642_v57 = vcombine.low %v2183_v26, %v2187_v50  ;;  %v3649_v1 = vrot.slane %v3639_v52, %v5323_v15  ;;  %v1939_v58 = vrot.slane %v5546_v49, %v5301_v38 }
 0x2ea   : > { %v3656_v59 = vrot.slane %v3640_v2, %v5323_v15  ;;  %v3663_v51 = vrot.slane %v3641_v53, %v5323_v15  ;;  %v1943_v61 = vrot.slane %v5546_v49, %v5304_v7  ;;  %v1947_v63 = vrot.slane %v5546_v49, %v5307_v8 }
 0x2eb   : > { %v3246_v14 = vcombine.low %v3238_v24, %v3245_v55  ;;  %v3670_v5 = vrot.slane %v3642_v57, %v5323_v15  ;;  %v1951_v16 = vrot.slane %v5546_v49, %v5310_v10  ;;  %v1955_v17 = vrot.slane %v5546_v49, %v5313_v11 }
 0x2ec   : > { %v3671_v21 = vcombine.low %v3649_v1, %v3656_v59  ;;  %v1959_v22 = vrot.slane %v5546_v49, %v5316_v12  ;;  %v1963_v23 = vrot.slane %v5546_v49, %v5319_v13  ;;  %v3296_v25 = vcombine.low %v1935_v54, %v1939_v58 }
 0x2ed   : > { %3939 = vperm.xlu1 %4694, %v3246_v14   ;;  %v3672_v27 = vcombine.low %v3663_v51, %v3670_v5  ;;  %v3297_v28 = vcombine.low %v1943_v61, %v1947_v63  ;;  %v3298_v32 = vcombine.low %v1951_v16, %v1955_v17  ;;  %v1999_v33 = vrot.slane %v5575_v30, %v5298_v6 }
 0x2ee   : > { %v3679_v31 = vrot.slane %v3671_v21, %v5323_v15  ;;  %v3299_v19 = vcombine.low %v1959_v22, %v1963_v23  ;;  %v3306_v34 = vrot.slane %v3296_v25, %v5323_v15  ;;  %v2003_v42 = vrot.slane %v5575_v30, %v5301_v38 }
 0x2ef   : > { %v3686_v20 = vrot.slane %v3672_v27, %v5323_v15  ;;  %v3313_v49 = vrot.slane %v3297_v28, %v5323_v15  ;;  %v3320_v37 = vrot.slane %v3298_v32, %v5323_v15  ;;  %v2007_v39 = vrot.slane %v5575_v30, %v5304_v7 }
 0x2f0   : > { %v3327_v40 = vrot.slane %v3299_v19, %v5323_v15  ;;  %v2011_v60 = vrot.slane %v5575_v30, %v5307_v8  ;;  %v2015_v18 = vrot.slane %v5575_v30, %v5310_v10  ;;  %v2019_v4 = vrot.slane %v5575_v30, %v5313_v11 }
 0x2f1   : > { %v3687_v43 = vcombine.low %v3679_v31, %v3686_v20  ;;  %v3328_v44 = vcombine.low %v3306_v34, %v3313_v49  ;;  %v2023_v45 = vrot.slane %v5575_v30, %v5316_v12  ;;  %v2027_v48 = vrot.slane %v5575_v30, %v5319_v13 }
 0x2f2   : > { %v3329_v46 = vcombine.low %v3320_v37, %v3327_v40  ;;  %v3394_v26 = vcombine.low %v1999_v33, %v2003_v42  ;;  %v3395_v50 = vcombine.low %v2007_v39, %v2011_v60  ;;  %v3396_v52 = vcombine.low %v2015_v18, %v2019_v4 }
 0x2f3   : > { %3966 = vperm.xlu0 %4695, %v3687_v43   ;;  %v3336_v24 = vrot.slane %v3328_v44, %v5323_v15  ;;  %v3397_v2 = vcombine.low %v2023_v45, %v2027_v48  ;;  %v2127_v53 = vrot.slane %v5654_v47, %v5298_v6  ;;  %v2131_v54 = vrot.slane %v5654_v47, %v5301_v38 }
 0x2f4   : > { %v3343_v55 = vrot.slane %v3329_v46, %v5323_v15  ;;  %v3404_v57 = vrot.slane %v3394_v26, %v5323_v15  ;;  %v3411_v30 = vrot.slane %v3395_v50, %v5323_v15  ;;  %v3418_v1 = vrot.slane %v3396_v52, %v5323_v15 }
 0x2f5   : > { %v3425_v58 = vrot.slane %v3397_v2, %v5323_v15  ;;  %v2135_v59 = vrot.slane %v5654_v47, %v5304_v7  ;;  %v2139_v51 = vrot.slane %v5654_v47, %v5307_v8  ;;  %v2143_v61 = vrot.slane %v5654_v47, %v5310_v10 }
 0x2f6   : > { %v3344_v63 = vcombine.low %v3336_v24, %v3343_v55  ;;  %v3426_v14 = vcombine.low %v3404_v57, %v3411_v30  ;;  %v2147_v5 = vrot.slane %v5654_v47, %v5313_v11  ;;  %v2151_v16 = vrot.slane %v5654_v47, %v5316_v12 }
 0x2f7   : > { %v3427_v17 = vcombine.low %v3418_v1, %v3425_v58  ;;  %v2155_v21 = vrot.slane %v5654_v47, %v5319_v13  ;;  %v3590_v22 = vcombine.low %v2127_v53, %v2131_v54  ;;  %v3591_v23 = vcombine.low %v2135_v59, %v2139_v51 }
 0x2f8   : > { %3945 = vperm.xlu1 %4694, %v3344_v63   ;;  %v3434_v25 = vrot.slane %v3426_v14, %v5323_v15  ;;  %v3592_v27 = vcombine.low %v2143_v61, %v2147_v5  ;;  %v2063_v28 = vrot.slane %v5604_v62, %v5298_v6  ;;  %v2067_v32 = vrot.slane %v5604_v62, %v5301_v38 }
 0x2f9   : > { %v3441_v33 = vrot.slane %v3427_v17, %v5323_v15  ;;  %v3593_v31 = vcombine.low %v2151_v16, %v2155_v21  ;;  %v3600_v19 = vrot.slane %v3590_v22, %v5323_v15  ;;  %v3607_v34 = vrot.slane %v3591_v23, %v5323_v15 }
 0x2fa   : > { %v3614_v47 = vrot.slane %v3592_v27, %v5323_v15  ;;  %v2071_v42 = vrot.slane %v5604_v62, %v5304_v7  ;;  %v2075_v20 = vrot.slane %v5604_v62, %v5307_v8  ;;  %v2079_v49 = vrot.slane %v5604_v62, %v5310_v10 }
 0x2fb   : > { %v3442_v37 = vcombine.low %v3434_v25, %v3441_v33  ;;  %v3621_v39 = vrot.slane %v3593_v31, %v5323_v15  ;;  %v3622_v40 = vcombine.low %v3600_v19, %v3607_v34  ;;  %v2083_v60 = vrot.slane %v5604_v62, %v5313_v11 }
 0x2fc   : > { %v2087_v18 = vrot.slane %v5604_v62, %v5316_v12  ;;  %v2091_v4 = vrot.slane %v5604_v62, %v5319_v13  ;;  %v3492_v43 = vcombine.low %v2063_v28, %v2067_v32  ;;  %v3493_v44 = vcombine.low %v2071_v42, %v2075_v20 }
 0x2fd   : > { %3951 = vperm.xlu1 %4694, %v3442_v37   ;;  %v3623_v45 = vcombine.low %v3614_v47, %v3621_v39  ;;  %v3630_v48 = vrot.slane %v3622_v40, %v5323_v15  ;;  %v3494_v46 = vcombine.low %v2079_v49, %v2083_v60  ;;  %v2223_v26 = vrot.slane %v5746_v29, %v5298_v6 }
 0x2fe   : > { %v3495_v50 = vcombine.low %v2087_v18, %v2091_v4  ;;  %v3502_v52 = vrot.slane %v3492_v43, %v5323_v15  ;;  %v3509_v24 = vrot.slane %v3493_v44, %v5323_v15  ;;  %v2227_v2 = vrot.slane %v5746_v29, %v5301_v38 }
 0x2ff   : > { %v3637_v62 = vrot.slane %v3623_v45, %v5323_v15  ;;  %v3516_v53 = vrot.slane %v3494_v46, %v5323_v15  ;;  %v2231_v54 = vrot.slane %v5746_v29, %v5304_v7  ;;  %v2235_v55 = vrot.slane %v5746_v29, %v5307_v8 }
 0x300   : > { %v3523_v57 = vrot.slane %v3495_v50, %v5323_v15  ;;  %v3524_v30 = vcombine.low %v3502_v52, %v3509_v24  ;;  %v2239_v1 = vrot.slane %v5746_v29, %v5310_v10  ;;  %v2243_v58 = vrot.slane %v5746_v29, %v5313_v11 }
 0x301   : > { %v3638_v59 = vcombine.low %v3630_v48, %v3637_v62  ;;  %v2247_v51 = vrot.slane %v5746_v29, %v5316_v12  ;;  %v2251_v61 = vrot.slane %v5746_v29, %v5319_v13  ;;  %v3737_v63 = vcombine.low %v2223_v26, %v2227_v2 }
 0x302   : > { %v3525_v14 = vcombine.low %v3516_v53, %v3523_v57  ;;  %v3532_v5 = vrot.slane %v3524_v30, %v5323_v15  ;;  %v3738_v16 = vcombine.low %v2231_v54, %v2235_v55  ;;  %v3739_v17 = vcombine.low %v2239_v1, %v2243_v58 }
 0x303   : > { %3963 = vperm.xlu0 %4695, %v3638_v59   ;;  %v3740_v21 = vcombine.low %v2247_v51, %v2251_v61  ;;  %v3747_v22 = vrot.slane %v3737_v63, %v5323_v15  ;;  %v1743_v23 = vrot.slane %v5442_v41, %v5298_v6  ;;  %v1747_v25 = vrot.slane %v5442_v41, %v5301_v38 }
 0x304   : > { %v3539_v27 = vrot.slane %v3525_v14, %v5323_v15  ;;  %v3754_v29 = vrot.slane %v3738_v16, %v5323_v15  ;;  %v3761_v28 = vrot.slane %v3739_v17, %v5323_v15  ;;  %v1751_v32 = vrot.slane %v5442_v41, %v5304_v7 }
 0x305   : > { %v3768_v33 = vrot.slane %v3740_v21, %v5323_v15  ;;  %v1755_v31 = vrot.slane %v5442_v41, %v5307_v8  ;;  %v1759_v19 = vrot.slane %v5442_v41, %v5310_v10  ;;  %v1763_v34 = vrot.slane %v5442_v41, %v5313_v11 }
 0x306   : > { %v3540_v47 = vcombine.low %v3532_v5, %v3539_v27  ;;  %v3769_v42 = vcombine.low %v3747_v22, %v3754_v29  ;;  %v1767_v20 = vrot.slane %v5442_v41, %v5316_v12  ;;  %v1771_v49 = vrot.slane %v5442_v41, %v5319_v13 }
 0x307   : > { %v3770_v37 = vcombine.low %v3761_v28, %v3768_v33  ;;  %v3002_v39 = vcombine.low %v1743_v23, %v1747_v25  ;;  %v3003_v40 = vcombine.low %v1751_v32, %v1755_v31  ;;  %v3004_v60 = vcombine.low %v1759_v19, %v1763_v34 }
 0x308   : > { %3957 = vperm.xlu1 %4694, %v3540_v47   ;;  %v3777_v18 = vrot.slane %v3769_v42, %v5323_v15  ;;  %v3005_v4 = vcombine.low %v1767_v20, %v1771_v49  ;;  %v2191_v43 = vrot.slane %v5749_v56, %v5298_v6  ;;  %v2195_v44 = vrot.slane %v5749_v56, %v5301_v38 }
 0x309   : > { %v3784_v45 = vrot.slane %v3770_v37, %v5323_v15  ;;  %v3012_v48 = vrot.slane %v3002_v39, %v5323_v15  ;;  %v3019_v41 = vrot.slane %v3003_v40, %v5323_v15  ;;  %v3026_v46 = vrot.slane %v3004_v60, %v5323_v15 }
 0x30a   : > { %v3033_v26 = vrot.slane %v3005_v4, %v5323_v15  ;;  %v2199_v50 = vrot.slane %v5749_v56, %v5304_v7  ;;  %v2203_v52 = vrot.slane %v5749_v56, %v5307_v8  ;;  %v2207_v24 = vrot.slane %v5749_v56, %v5310_v10 }
 0x30b   : > { %v3785_v2 = vcombine.low %v3777_v18, %v3784_v45  ;;  %v3034_v62 = vcombine.low %v3012_v48, %v3019_v41  ;;  %v2211_v53 = vrot.slane %v5749_v56, %v5313_v11  ;;  %v2215_v54 = vrot.slane %v5749_v56, %v5316_v12 }
 0x30c   : > { %v3035_v55 = vcombine.low %v3026_v46, %v3033_v26  ;;  %v2219_v57 = vrot.slane %v5749_v56, %v5319_v13  ;;  %v3688_v30 = vcombine.low %v2191_v43, %v2195_v44  ;;  %v3689_v1 = vcombine.low %v2199_v50, %v2203_v52 }
 0x30d   : > { %3972 = vperm.xlu0 %4695, %v3785_v2   ;;  %v3042_v58 = vrot.slane %v3034_v62, %v5323_v15  ;;  %v3690_v59 = vcombine.low %v2207_v24, %v2211_v53  ;;  %v1775_v51 = vrot.slane %v5465_v9, %v5298_v6  ;;  %v1779_v61 = vrot.slane %v5465_v9, %v5301_v38 }
 0x30e   : > { %v3049_v63 = vrot.slane %v3035_v55, %v5323_v15  ;;  %v3691_v14 = vcombine.low %v2215_v54, %v2219_v57  ;;  %v3698_v5 = vrot.slane %v3688_v30, %v5323_v15  ;;  %v3705_v16 = vrot.slane %v3689_v1, %v5323_v15 }
 0x30f   : > { %v3712_v56 = vrot.slane %v3690_v59, %v5323_v15  ;;  %v1783_v17 = vrot.slane %v5465_v9, %v5304_v7  ;;  %v1787_v21 = vrot.slane %v5465_v9, %v5307_v8  ;;  %v1791_v22 = vrot.slane %v5465_v9, %v5310_v10 }
 0x310   : > { %v3050_v23 = vcombine.low %v3042_v58, %v3049_v63  ;;  %v3719_v25 = vrot.slane %v3691_v14, %v5323_v15  ;;  %v3720_v27 = vcombine.low %v3698_v5, %v3705_v16  ;;  %v1795_v29 = vrot.slane %v5465_v9, %v5313_v11 }
 0x311   : > { %v1799_v28 = vrot.slane %v5465_v9, %v5316_v12  ;;  %v1803_v32 = vrot.slane %v5465_v9, %v5319_v13  ;;  %v3051_v33 = vcombine.low %v1775_v51, %v1779_v61  ;;  %v3052_v31 = vcombine.low %v1783_v17, %v1787_v21 }
 0x312   : > { %3927 = vperm.xlu1 %4694, %v3050_v23   ;;  %v3721_v19 = vcombine.low %v3712_v56, %v3719_v25  ;;  %v3728_v34 = vrot.slane %v3720_v27, %v5323_v15  ;;  %v3053_v47 = vcombine.low %v1791_v22, %v1795_v29  ;;  %v2255_v42 = vrot.slane %v5844_v36, %v5298_v6 }
 0x313   : > { %v3054_v20 = vcombine.low %v1799_v28, %v1803_v32  ;;  %v3061_v49 = vrot.slane %v3051_v33, %v5323_v15  ;;  %v3068_v37 = vrot.slane %v3052_v31, %v5323_v15  ;;  %v2259_v39 = vrot.slane %v5844_v36, %v5301_v38  ;;  %v3889_v28 = vpop.permute.xlu1 %3888 }
 0x314   : > { %v3735_v9 = vrot.slane %v3721_v19, %v5323_v15  ;;  %v3075_v40 = vrot.slane %v3053_v47, %v5323_v15  ;;  %v2263_v60 = vrot.slane %v5844_v36, %v5304_v7  ;;  %v2267_v18 = vrot.slane %v5844_v36, %v5307_v8 }
 0x315   : > { %v3082_v4 = vrot.slane %v3054_v20, %v5323_v15  ;;  %v3083_v43 = vcombine.low %v3061_v49, %v3068_v37  ;;  %v2271_v44 = vrot.slane %v5844_v36, %v5310_v10  ;;  %v2275_v45 = vrot.slane %v5844_v36, %v5313_v11  ;;  %v3886_v49 = vpop.permute.xlu0 %3885 }
 0x316   : > { %v3736_v48 = vcombine.low %v3728_v34, %v3735_v9  ;;  %v2279_v41 = vrot.slane %v5844_v36, %v5316_v12  ;;  %v2283_v46 = vrot.slane %v5844_v36, %v5319_v13  ;;  %v3786_v26 = vcombine.low %v2255_v42, %v2259_v39 }
 0x317   : > { %v3084_v50 = vcombine.low %v3075_v40, %v3082_v4  ;;  %v3091_v52 = vrot.slane %v3083_v43, %v5323_v15  ;;  %v3787_v24 = vcombine.low %v2263_v60, %v2267_v18  ;;  %v3788_v2 = vcombine.low %v2271_v44, %v2275_v45  ;;  %v6094_v32 = vpop.permute.xlu1 %3894 }
 0x318   : > { %3969 = vperm.xlu0 %4695, %v3736_v48   ;;  %v3789_v62 = vcombine.low %v2279_v41, %v2283_v46  ;;  %v3796_v53 = vrot.slane %v3786_v26, %v5323_v15  ;;  %v2287_v54 = vrot.slane %v5841_v35, %v5298_v6  ;;  %v2291_v55 = vrot.slane %v5841_v35, %v5301_v38 }
 0x319   : > { %v3098_v57 = vrot.slane %v3084_v50, %v5323_v15  ;;  %v3803_v36 = vrot.slane %v3787_v24, %v5323_v15  ;;  %v3810_v30 = vrot.slane %v3788_v2, %v5323_v15  ;;  %v2295_v1 = vrot.slane %v5841_v35, %v5304_v7 }
 0x31a   : > { %v3817_v58 = vrot.slane %v3789_v62, %v5323_v15  ;;  %v2299_v59 = vrot.slane %v5841_v35, %v5307_v8  ;;  %v2303_v6 = vrot.slane %v5841_v35, %v5310_v10  ;;  %v2307_v38 = vrot.slane %v5841_v35, %v5313_v11 }
 0x31b   : > { %v3099_v51 = vcombine.low %v3091_v52, %v3098_v57  ;;  %v3818_v61 = vcombine.low %v3796_v53, %v3803_v36  ;;  %v2311_v63 = vrot.slane %v5841_v35, %v5316_v12  ;;  %v2315_v14 = vrot.slane %v5841_v35, %v5319_v13  ;;  %v3892_v33 = vpop.permute.xlu1 %3891 }
 0x31c   : > { %v3819_v7 = vcombine.low %v3810_v30, %v3817_v58  ;;  %v3835_v5 = vcombine.low %v2287_v54, %v2291_v55  ;;  %v3836_v16 = vcombine.low %v2295_v1, %v2299_v59  ;;  %v3837_v56 = vcombine.low %v2303_v6, %v2307_v38 }
 0x31d   : > { %3930 = vperm.xlu1 %4694, %v3099_v51   ;;  %v3826_v8 = vrot.slane %v3818_v61, %v5323_v15  ;;  %v3838_v17 = vcombine.low %v2311_v63, %v2315_v14  ;;  %v6119_v45 = vand.u32 127, %v1292_v0 }
 0x31e   : > { %v3833_v10 = vrot.slane %v3819_v7, %v5323_v15  ;;  %v3845_v11 = vrot.slane %v3835_v5, %v5323_v15  ;;  %v3852_v21 = vrot.slane %v3836_v16, %v5323_v15  ;;  %v3859_v22 = vrot.slane %v3837_v56, %v5323_v15 }
 0x31f   : > { %v3866_v12 = vrot.slane %v3838_v17, %v5323_v15  ;;  %v6096_v31 = vpop.permute.xlu1 %3900  ;;  %v6108_v37 = vpop.permute.xlu0 %3912  ;;  %v3993_v41 = vadd.s32 4294967280, %v6119_v45  ;;  %v3986_v46 = vadd.s32 4294967288, %v6119_v45  ;;  %v3984_v50 = vsub.s32 %v6119_v45, %v5293_v3 }
 0x320   : > { %v3834_v23 = vcombine.low %v3826_v8, %v3833_v10  ;;  %v3867_v13 = vcombine.low %v3845_v11, %v3852_v21  ;;  %v4007_v2 = vadd.s32 4294967264, %v6119_v45  ;;  %v4000_v53 = vadd.s32 4294967272, %v6119_v45 }
 0x321   : > { %v3868_v35 = vcombine.low %v3859_v22, %v3866_v12  ;;  %v3996_v24 = vsub.s32 %v3993_v41, %v5293_v3  ;;  %v3989_v62 = vsub.s32 %v3986_v46, %v5293_v3  ;;  %v4014_v57 = vadd.s32 4294967256, %v6119_v45 }
 0x322   : > { %3975 = vperm.xlu0 %4695, %v3834_v23   ;;  %v3875_v25 = vrot.slane %v3867_v13, %v5323_v15  ;;  %v3985_v1 = vrot.slane %v3886_v49, %v3984_v50  ;;  %v4010_v58 = vsub.s32 %v4007_v2, %v5293_v3  ;;  %v4021_v59 = vadd.s32 4294967248, %v6119_v45 }
 0x323   : > { %v3882_v27 = vrot.slane %v3868_v35, %v5323_v15  ;;  %v6098_v19 = vpop.permute.xlu1 %3897  ;;  %v4003_v6 = vsub.s32 %v4000_v53, %v5293_v3  ;;  %v3997_v38 = vrot.slane %v3892_v33, %v3996_v24  ;;  %v3990_v63 = vrot.slane %v3889_v28, %v3989_v62 }
 0x324   : > { %v4017_v5 = vsub.s32 %v4014_v57, %v5293_v3  ;;  %v4024_v8 = vsub.s32 %v4021_v59, %v5293_v3  ;;  %v4035_v17 = vadd.s32 4294967232, %v6119_v45  ;;  %v4011_v11 = vrot.slane %v6098_v19, %v4010_v58 }
 0x325   : > { %v3883_v29 = vcombine.low %v3875_v25, %v3882_v27  ;;  %v3992_v56 = vsel %vm3991_vm2, %v3990_v63, %v3985_v1  ;;  %v4028_v21 = vadd.s32 4294967240, %v6119_v45  ;;  %v4004_v23 = vrot.slane %v6094_v32, %v4003_v6 }
 0x326   : > { %v3999_v10 = vsel %vm3998_vm3, %v3997_v38, %v3992_v56  ;;  %v4042_v28 = vadd.s32 4294967224, %v6119_v45  ;;  %v4038_v33 = vsub.s32 %v4035_v17, %v5293_v3 }
 0x327   : > { %3978 = vperm.xlu0 %4695, %v3883_v29   ;;  %v6100_v34 = vpop.permute.xlu1 %3906  ;;  %v4006_v29 = vsel %vm4005_vm4, %v4004_v23, %v3999_v10  ;;  %v4031_v49 = vsub.s32 %v4028_v21, %v5293_v3 }
 0x328   : > { %v4013_v19 = vsel %vm4012_vm5, %v4011_v11, %v4006_v29 }
 0x32b   : > { %v6102_v47 = vpop.permute.xlu1 %3903 }
 0x32c   : > { %v4025_v32 = vrot.slane %v6102_v47, %v4024_v8 }
 0x330   : > { %v6104_v42 = vpop.permute.xlu1 %3909 }
 0x331   : > { %v4039_v47 = vrot.slane %v6104_v42, %v4038_v33 }
 0x336   : > { %v6106_v20 = vpop.permute.xlu1 %3918 }
 0x33c   : > { %v3937_v9 = vpop.permute.xlu0 %3936 }
 0x33d   : > { %v4098_v36 = vrot.slane %v3937_v9, %v3989_v62 }
 0x341   : > { %v6110_v39 = vpop.permute.xlu1 %3915 }
 0x347   : > { %v3943_v60 = vpop.permute.xlu0 %3942 }
 0x348   : > { %v4108_v16 = vrot.slane %v3943_v60, %v4003_v6  ;;  %v4049_v60 = vadd.s32 4294967216, %v6119_v45 }
 0x34a   : > { %v4052_v53 = vsub.s32 %v4049_v60, %v5293_v3 }
 0x34c   : > { %v6112_v40 = vpop.permute.xlu1 %3924  ;;  %v4053_v6 = vrot.slane %v6110_v39, %v4052_v53 }
 0x351   : > { %v3949_v4 = vpop.permute.xlu0 %3948 }
 0x352   : > { %v4118_v25 = vrot.slane %v3949_v4, %v4017_v5 }
 0x357   : > { %v6114_v18 = vpop.permute.xlu1 %3921 }
 0x35c   : > { %v6116_v44 = vpop.permute.xlu0 %3954 }
 0x35d   : > { %v4128_v41 = vrot.slane %v6116_v44, %v4031_v49  ;;  %v4056_v44 = vadd.s32 4294967208, %v6119_v45 }
 0x362   : > { %v3934_v43 = vpop.permute.xlu1 %3933 }
 0x363   : > { %v4094_v54 = vrot.slane %v3934_v43, %v3984_v50  ;;  %v4045_v50 = vsub.s32 %v4042_v28, %v5293_v3 }
 0x365   : > { %v4099_v51 = vsel %vm3991_vm2, %v4098_v36, %v4094_v54  ;;  %v4046_v57 = vrot.slane %v6108_v37, %v4045_v50  ;;  %v4084_v37 = vadd.s32 4294967176, %v6119_v45 }
 0x367   : > { %v6123_v26 = vpop.permute.xlu0 %3960  ;;  %v4087_v10 = vsub.s32 %v4084_v37, %v5293_v3 }
 0x36c   : > { %v3940_v48 = vpop.permute.xlu1 %3939 }
 0x36d   : > { %v4103_v55 = vrot.slane %v3940_v48, %v3996_v24  ;;  %v4018_v48 = vrot.slane %v6096_v31, %v4017_v5  ;;  %v4063_v24 = vadd.s32 4294967200, %v6119_v45  ;;  %v4032_v31 = vrot.slane %v6100_v34, %v4031_v49 }
 0x36e   : > { %v4077_v34 = vadd.s32 4294967184, %v6119_v45 }
 0x36f   : > { %v4104_v14 = vsel %vm3998_vm3, %v4103_v55, %v4099_v51  ;;  %v4138_v55 = vrot.slane %v6123_v26, %v4045_v50  ;;  %v4066_v1 = vsub.s32 %v4063_v24, %v5293_v3  ;;  %v4070_v26 = vadd.s32 4294967192, %v6119_v45 }
 0x370   : > { %v4109_v22 = vsel %vm4005_vm4, %v4108_v16, %v4104_v14  ;;  %v4080_v16 = vsub.s32 %v4077_v34, %v5293_v3 }
 0x371   : > { %v4067_v5 = vrot.slane %v6114_v18, %v4066_v1  ;;  %v4073_v17 = vsub.s32 %v4070_v26, %v5293_v3 }
 0x372   : > { %v6132_v30 = vpop.permute.xlu0 %3966 }
 0x377   : > { %v3946_v52 = vpop.permute.xlu1 %3945 }
 0x378   : > { %v4113_v7 = vrot.slane %v3946_v52, %v4010_v58  ;;  %v4020_v52 = vsel %vm4019_vm6, %v4018_v48, %v4013_v19 }
 0x379   : > { %v4027_v62 = vsel %vm4026_vm7, %v4025_v32, %v4020_v52 }
 0x37a   : > { %v4114_v13 = vsel %vm4012_vm5, %v4113_v7, %v4109_v22  ;;  %v4034_v36 = vsel %vm4033_vm8, %v4032_v31, %v4027_v62 }
 0x37b   : > { %v4119_v9 = vsel %vm4019_vm6, %v4118_v25, %v4114_v13  ;;  %v4041_v42 = vsel %vm4040_vm9, %v4039_v47, %v4034_v36  ;;  %v4074_v13 = vrot.slane %v6112_v40, %v4073_v17 }
 0x37c   : > { %v3952_v61 = vpop.permute.xlu1 %3951  ;;  %v4048_v14 = vsel %vm4047_vm10, %v4046_v57, %v4041_v42 }
 0x37d   : > { %v4123_v35 = vrot.slane %v3952_v61, %v4024_v8  ;;  %v4059_v61 = vsub.s32 %v4056_v44, %v5293_v3  ;;  %v4055_v39 = vsel %vm4054_vm11, %v4053_v6, %v4048_v14 }
 0x37f   : > { %v4124_v43 = vsel %vm4026_vm7, %v4123_v35, %v4119_v9  ;;  %v4148_v7 = vrot.slane %v6132_v30, %v4059_v61  ;;  %v4060_v8 = vrot.slane %v6106_v20, %v4059_v61 }
 0x380   : > { %v4129_v2 = vsel %vm4033_vm8, %v4128_v41, %v4124_v43 }
 0x381   : > { %v4062_v22 = vsel %vm4061_vm12, %v4060_v8, %v4055_v39 }
 0x382   : > { %v3964_v12 = vpop.permute.xlu0 %3963  ;;  %v4069_v30 = vsel %vm4068_vm13, %v4067_v5, %v4062_v22 }
 0x383   : > { %v4143_v38 = vrot.slane %v3964_v12, %v4052_v53  ;;  %v4076_v25 = vsel %vm4075_vm14, %v4074_v13, %v4069_v30 }
 0x387   : > { %v3958_v27 = vpop.permute.xlu1 %3957 }
 0x388   : > { %v4133_v4 = vrot.slane %v3958_v27, %v4038_v33 }
 0x38a   : > { %v4134_v54 = vsel %vm4040_vm9, %v4133_v4, %v4129_v2 }
 0x38b   : > { %v4139_v58 = vsel %vm4047_vm10, %v4138_v55, %v4134_v54 }
 0x38c   : > { %v3973_v46 = vpop.permute.xlu0 %3972  ;;  %v4144_v63 = vsel %vm4054_vm11, %v4143_v38, %v4139_v58 }
 0x38d   : > { %v4149_v45 = vsel %vm4061_vm12, %v4148_v7, %v4144_v63  ;;  %v4158_v20 = vrot.slane %v3973_v46, %v4073_v17 }
 0x391   : > { %v3928_v51 = vpop.permute.xlu1 %3927 }
 0x392   : > { %v4081_v12 = vrot.slane %v3928_v51, %v4080_v16 }
 0x394   : > { %v4083_v28 = vsel %vm4082_vm15, %v4081_v12, %v4076_v25 }
 0x397   : > { %v3970_v59 = vpop.permute.xlu0 %3969 }
 0x398   : > { %v4153_v56 = vrot.slane %v3970_v59, %v4066_v1 }
 0x39a   : > { %v4154_v18 = vsel %vm4068_vm13, %v4153_v56, %v4149_v45 }
 0x39b   : > { %v4159_v27 = vsel %vm4075_vm14, %v4158_v20, %v4154_v18 }
 0x39c   : > { %v3931_v21 = vpop.permute.xlu1 %3930 }
 0x39d   : > { %v4088_v35 = vrot.slane %v3931_v21, %v4087_v10 }
 0x39f   : > { %v4090_v19 = vsel %vm4089_vm0, %v4088_v35, %v4083_v28 }
 0x3a1   : > { %v3976_v11 = vpop.permute.xlu0 %3975 }
 0x3a2   : > { %v4163_v23 = vrot.slane %v3976_v11, %v4080_v16 }
 0x3a4   : > { %v4164_v33 = vsel %vm4082_vm15, %v4163_v23, %v4159_v27 }
 0x3a6   : > { %v3979_v3 = vpop.permute.xlu0 %3978 }
 0x3a7   : > { %v4168_v29 = vrot.slane %v3979_v3, %v4087_v10 }
 0x3a9   : > { %v4169_v49 = vsel %vm4089_vm0, %v4168_v29, %v4164_v33 }
 0x3aa   : > { %v4170_v9 = vcombine.low %v4090_v19, %v4169_v49 }
 0x3ac   : > { %v4177_v40 = vrot.slane %v4170_v9, %v5323_v15 }
 0x3ae   : > { %v4184_v32 = vrot.slane %v4177_v40, %v5323_v15 }
 0x3b0   : > { %4190 = vst.msk [vmem:[%s301_s28] sm:$0x3] %vm4188_vm1, %v4184_v32 }
 0x3b1   : > { %4773 = shalt.err (!%p4770_p3)
}
 0x3b2   : > { %s4774_s24 = scalar_lea.hbm %s6191_s6, 32  ;;  %s4778_s25 = scalar_lea.hbm %s6242_s7, 64 }
 0x3b3   : > { %p4775_p4 = scmp.ne.s32.totalorder %s6191_s6, %s4774_s24  ;;  %p4779_p9 = scmp.lt.u32.totalorder %s6191_s6, %s6242_s7 }
 0x3b4   : > { %p4780_p10 = scmp.lt.u32.totalorder %s4778_s25, %s4774_s24  ;;  %p4782_p12 = scmp.lt.u32.totalorder %s4774_s24, %s6191_s6 }
 0x3b5   : > { %p4776_p7 = pnand %p4775_p4, %p4910_p5 }
 0x3b6   : > { %p4781_p11 = por %p4780_p10, %p4779_p9 }
 0x3b7   : > { %p4777_p8 = pneg %p4776_p7 }
 0x3b8   : > { %p4783_p13 = por %p4782_p12, %p4781_p11 }
 0x3ba   : > { %p4784_p0 = pnand %p4783_p13, %p4777_p8 }
 0x3bc   : > { %4787 = shalt.err (!%p4784_p0)
}
 0x3bd   : > { %4653 = dma.vmem_to_hbm [thread:$0]  (%p4910_p5), %s6193_s11, 32, %s6191_s6, %s4224_s19  }
 0x3be PF: > { %p4659_p1 = scmp.ge.s32.totalorder %s4822_s10, 2  ;;  %s4259_s13 = sand.u32 1, %s4810_s29  }
 0x3bf   : > { %s4260_s14 = scalar_lea.sflag [#allocation4], %s4259_s13 }
 0x3c0   : > { %p4656_p2 = pnand %p4659_p1, %p4914_p6 }
 0x3c2   : > { %4805 = dma.done.wait (!%p4656_p2), %s4260_s14, 32  }
 0x3c3   : > { %4807 = vsyncadd (!%p4656_p2), %s4260_s14, 4294967264  ;;  %p20_p3 = scmp.ge.s32.totalorder %s4898_s12, 4   ;;  %s6246_s29 = smov %s4814_s30 }
 0x3c4   : > { %s6247_s30 = smov %s4818_s9  ;;  %s6248_s9 = smov %s4908_s15 }
 0x3c5   : > { %s6249_s10 = smov %s4898_s12  ;;  %22 = sbr.rel (!%p20_p3) target bundleno = 5 (0x5), region = 95 }
 0x3cc   :  { %4273 = vsyncpa [#allocation4], 1 }
 0x3cd   :  { %4275 = vsyncpa [#allocation4 + $0x1], 1 }

</bundles_post_ra>
